<compile_context>
chip_gen: v7x
topology: tpu7x:2x2x1
jax: 0.10.0
libtpu: 0.0.40
codegen_flags: <defaults>
</compile_context>

<pallas_src>
import math

import jax
import jax.numpy as jnp
from jax.experimental import pallas as pl
from jax.experimental.pallas import tpu as pltpu

IN_DIM = 28 * 28     # 784
HID = 400
HID_PAD = 512        # 400 padded to a lane-dense multiple of 128
LATENT = 20
ML_PAD = 256         # fused mu|logvar block padded to 2 vregs
LV_OFF = 128         # logvar starts on a lane (vreg) boundary


def _round_up(x, m):
    return ((x + m - 1) // m) * m


def _choose_tb(B, tb_max):
    """Batch tile: multiple of 16; >=2 grid steps for B>=32 (v7x megacore)."""
    if B < 32:
        return _round_up(B, 16)
    return min(tb_max, _round_up(pl.cdiv(B, 2), 16))


def _vae_kernel(
    x_ref,                    # (TB, 784)       f32   (cast to bf16 in-kernel)
    we_ref, be_ref,           # (784, 512) bf16, (1, 512) f32
    wml_ref, bml_ref,         # (512, 256) f32,  (1, 256) f32  (mu @0, logvar @128)
    wd1_ref, bd1_ref,         # (20, 512)  f32,  (1, 512) f32
    wd2_ref, bd2_ref,         # (512, 784) bf16, (1, 784) f32
    eps_ref,                  # (TB, 20)   f32   standard-normal noise
    z_ref,                    # out: (TB, 784) bf16
    ml_ref,                   # out: (TB, 256) f32  (mu @0, logvar @128)
):
    # ---- encoder: cast x on the VPU (free slot), big matmul in bf16, f32 acc ----
    h = jnp.dot(x_ref[...].astype(jnp.bfloat16), we_ref[...],
                preferred_element_type=jnp.float32) + be_ref[...]
    h = jnp.maximum(h, 0.0)                                    # ReLU (lane-dense 512)

    # ---- fused, lane-aligned mean / logvar projection (one MXU pass) ----
    ml = jnp.dot(h, wml_ref[...],
                 preferred_element_type=jnp.float32) + bml_ref[...]
    mu = ml[:, :LATENT]                      # lanes 0..19 of vreg 0
    lv = ml[:, LV_OFF:LV_OFF + LATENT]       # lanes 0..19 of vreg 1 (no cross-lane shuffle)

    # ---- reparametrization: z = eps * exp(0.5 * logvar) + mu (f32) ----
    y = eps_ref[...] * jnp.exp(0.5 * lv) + mu

    # ---- decoder ----
    d1 = jnp.dot(y, wd1_ref[...],
                 preferred_element_type=jnp.float32) + bd1_ref[...]
    d1 = jnp.maximum(d1, 0.0)                                  # ReLU (lane-dense 512)
    logits = jnp.dot(d1.astype(jnp.bfloat16), wd2_ref[...],
                     preferred_element_type=jnp.float32) + bd2_ref[...]

    # sigmoid(x) = 0.5*tanh(0.5*x) + 0.5 : 1 EUP op/elem, evaluated in bf16
    t = jnp.tanh((0.5 * logits).astype(jnp.bfloat16))
    z_ref[...] = (0.5 * t + 0.5).astype(z_ref.dtype)
    ml_ref[...] = ml


def prepare_params(params):
    """One-time packing: bf16 big weights, fused+lane-padded mu|logvar, HID->512.

    Call this once per parameter set (NOT per forward) — its cost is amortized."""
    we, be, wmu, bmu, wlv, blv, wd1, bd1, wd2, bd2 = params

    we_p = (jnp.zeros((IN_DIM, HID_PAD), jnp.float32)
            .at[:, :HID].set(we)).astype(jnp.bfloat16)
    be_p = jnp.zeros((1, HID_PAD), jnp.float32).at[:, :HID].set(be)

    wml_p = (jnp.zeros((HID_PAD, ML_PAD), jnp.float32)
             .at[:HID, :LATENT].set(wmu)
             .at[:HID, LV_OFF:LV_OFF + LATENT].set(wlv))
    bml_p = (jnp.zeros((1, ML_PAD), jnp.float32)
             .at[:, :LATENT].set(bmu)
             .at[:, LV_OFF:LV_OFF + LATENT].set(blv))

    wd1_p = jnp.zeros((LATENT, HID_PAD), jnp.float32).at[:, :HID].set(wd1)
    bd1_p = jnp.zeros((1, HID_PAD), jnp.float32).at[:, :HID].set(bd1)

    wd2_p = (jnp.zeros((HID_PAD, IN_DIM), jnp.float32)
             .at[:HID, :].set(wd2)).astype(jnp.bfloat16)

    return (we_p, be_p, wml_p, bml_p, wd1_p, bd1_p, wd2_p, bd2)


def vae_forward(x, prepped, eps, *, tb_max=512):
    """x: (B, 784) f32, eps: (B, 20) f32 standard normal, prepped: prepare_params(...)."""
    B = x.shape[0]
    we_p, be_p, wml_p, bml_p, wd1_p, bd1_p, wd2_p, bd2 = prepped

    # ---- batch tiling: pad B to a multiple of the tile (x stays f32) ----
    TB = _choose_tb(B, tb_max)
    B_pad = _round_up(B, TB)
    if B_pad != B:
        x_p = jnp.pad(x, ((0, B_pad - B), (0, 0)))
        eps_p = jnp.pad(eps, ((0, B_pad - B), (0, 0)))
    else:
        x_p, eps_p = x, eps

    grid = (B_pad // TB,)
    vmem = pltpu.MemorySpace.VMEM
    rep = lambda i: (0, 0)        # weights: same block every step -> VMEM-resident
    batched = lambda i: (i, 0)    # activations: tile over batch

    flops = 2 * B_pad * (IN_DIM * HID_PAD + HID_PAD * ML_PAD
                         + LATENT * HID_PAD + HID_PAD * IN_DIM)
    transcendentals = B_pad * (LATENT + IN_DIM)     # exp (reparam) + tanh per pixel
    bytes_accessed = (
        we_p.size * 2 + wd2_p.size * 2 + wml_p.size * 4 + wd1_p.size * 4
        + (be_p.size + bml_p.size + bd1_p.size + bd2.size) * 4
        + B_pad * (IN_DIM * 4 + LATENT * 4)          # x f32 in, eps f32 in
        + B_pad * (IN_DIM * 2 + ML_PAD * 4)          # z bf16 out, mu|logvar f32 out
    )

    z, ml = pl.pallas_call(
        _vae_kernel,
        out_shape=(
            jax.ShapeDtypeStruct((B_pad, IN_DIM), jnp.bfloat16),   # z (sigmoid)
            jax.ShapeDtypeStruct((B_pad, ML_PAD), jnp.float32),    # mu|logvar
        ),
        grid=grid,
        in_specs=[
            pl.BlockSpec((TB, IN_DIM), batched, memory_space=vmem),        # x (f32)
            pl.BlockSpec((IN_DIM, HID_PAD), rep, memory_space=vmem),       # we (bf16)
            pl.BlockSpec((1, HID_PAD), rep, memory_space=vmem),            # be
            pl.BlockSpec((HID_PAD, ML_PAD), rep, memory_space=vmem),       # wml
            pl.BlockSpec((1, ML_PAD), rep, memory_space=vmem),             # bml
            pl.BlockSpec((LATENT, HID_PAD), rep, memory_space=vmem),       # wd1
            pl.BlockSpec((1, HID_PAD), rep, memory_space=vmem),            # bd1
            pl.BlockSpec((HID_PAD, IN_DIM), rep, memory_space=vmem),       # wd2 (bf16)
            pl.BlockSpec((1, IN_DIM), rep, memory_space=vmem),             # bd2
            pl.BlockSpec((TB, LATENT), batched, memory_space=vmem),        # eps
        ],
        out_specs=(
            pl.BlockSpec((TB, IN_DIM), batched, memory_space=vmem),
            pl.BlockSpec((TB, ML_PAD), batched, memory_space=vmem),
        ),
        compiler_params=pltpu.CompilerParams(
            dimension_semantics=("parallel",),       # shards batch tiles on v7x's 2 TCs
            vmem_limit_bytes=32 * 1024 * 1024,
        ),
        cost_estimate=pl.CostEstimate(
            flops=flops,
            transcendentals=transcendentals,
            bytes_accessed=bytes_accessed,
        ),
    )(x_p, we_p, be_p, wml_p, bml_p, wd1_p, bd1_p, wd2_p, bd2, eps_p)

    z = z[:B]
    mu = ml[:B, :LATENT]
    logvar = ml[:B, LV_OFF:LV_OFF + LATENT]
    generated_imgs = z.reshape(B, 1, 28, 28)   # NCHW, like the PyTorch module (bf16)
    return generated_imgs, z, mu, logvar


def init_params(key):
    """Deterministic init mimicking nn.Linear default (U(-1/sqrt(fan_in), ...)).

    Weights are stored as (in_features, out_features)."""
    def linear(k, fan_in, fan_out):
        kw, kb = jax.random.split(k)
        bound = 1.0 / math.sqrt(fan_in)
        w = jax.random.uniform(kw, (fan_in, fan_out), jnp.float32, -bound, bound)
        b = jax.random.uniform(kb, (1, fan_out), jnp.float32, -bound, bound)
        return w, b

    k1, k2, k3, k4, k5 = jax.random.split(key, 5)
    we, be = linear(k1, IN_DIM, HID)      # encoderlayer
    wmu, bmu = linear(k2, HID, LATENT)    # mean
    wlv, blv = linear(k3, HID, LATENT)    # logvar
    wd1, bd1 = linear(k4, LATENT, HID)    # decoder1
    wd2, bd2 = linear(k5, HID, IN_DIM)    # decoder2
    return (we, be, wmu, bmu, wlv, blv, wd1, bd1, wd2, bd2)


if __name__ == "__main__":
    key = jax.random.PRNGKey(0)
    k_params, k_x, k_eps = jax.random.split(key, 3)

    B = 8
    params = init_params(k_params)
    prepped = prepare_params(params)      # one-time prep, hoisted out of the forward

    # Input images, flattened to (B, 784) as the module's forward expects.
    x = jax.random.uniform(k_x, (B, IN_DIM), jnp.float32)
    # Noise for reparametrization (torch.randn equivalent), generated host-side.
    # TODO(synk): in-kernel pltpu.prng_seed + pltpu.stateful_normal could replace
    # the host-side eps input and its HBM DMA (kept explicit here for testability).
    eps = jax.random.normal(k_eps, (B, LATENT), jnp.float32)

    fwd = jax.jit(vae_forward)
    imgs, z, mu, logvar = fwd(x, prepped, eps)
    jax.block_until_ready((imgs, z, mu, logvar))

    # Pure-f32 JAX reference (kernel uses bf16 for the two big matmuls and the
    # sigmoid/z output, so tolerances are relaxed accordingly).
    we, be, wmu, bmu, wlv, blv, wd1, bd1, wd2, bd2 = params
    h = jnp.maximum(x @ we + be, 0.0)
    mu_ref = h @ wmu + bmu
    lv_ref = h @ wlv + blv
    y_ref = eps * jnp.exp(0.5 * lv_ref) + mu_ref
    d1 = jnp.maximum(y_ref @ wd1 + bd1, 0.0)
    z_ref = jax.nn.sigmoid(d1 @ wd2 + bd2)

    assert imgs.shape == (B, 1, 28, 28)
    assert jnp.allclose(z.astype(jnp.float32), z_ref, atol=2e-2)
    assert jnp.allclose(mu, mu_ref, atol=2e-2)
    assert jnp.allclose(logvar, lv_ref, atol=2e-2)

    print("KERNEL_OK")
</pallas_src>

<mosaic_0001>
module attributes {stable_mosaic.version = 11 : i64} {
  func.func @_vae_kernel(%arg0: i32, %arg1: memref<16x784xf32, #tpu.memory_space<vmem>>, %arg2: memref<784x512xbf16, #tpu.memory_space<vmem>>, %arg3: memref<1x512xf32, #tpu.memory_space<vmem>>, %arg4: memref<512x256xf32, #tpu.memory_space<vmem>>, %arg5: memref<1x256xf32, #tpu.memory_space<vmem>>, %arg6: memref<20x512xf32, #tpu.memory_space<vmem>>, %arg7: memref<1x512xf32, #tpu.memory_space<vmem>>, %arg8: memref<512x784xbf16, #tpu.memory_space<vmem>>, %arg9: memref<1x784xf32, #tpu.memory_space<vmem>>, %arg10: memref<16x20xf32, #tpu.memory_space<vmem>>, %arg11: memref<16x784xbf16, #tpu.memory_space<vmem>>, %arg12: memref<16x256xf32, #tpu.memory_space<vmem>>) attributes {dimension_semantics = [#tpu.dimension_semantics<parallel>], iteration_bounds = array<i64: 1>, scalar_prefetch = 0 : i64, scratch_operands = 0 : i64, tpu.core_type = #tpu.core_type<tc>, window_params = [{transform_indices = @transform_0, window_bounds = array<i64: 16, 784>}, {pipeline_mode = #tpu.pipeline_mode<synchronous>, transform_indices = @transform_1, window_bounds = array<i64: 784, 512>}, {pipeline_mode = #tpu.pipeline_mode<synchronous>, transform_indices = @transform_2, window_bounds = array<i64: 1, 512>}, {pipeline_mode = #tpu.pipeline_mode<synchronous>, transform_indices = @transform_3, window_bounds = array<i64: 512, 256>}, {pipeline_mode = #tpu.pipeline_mode<synchronous>, transform_indices = @transform_4, window_bounds = array<i64: 1, 256>}, {pipeline_mode = #tpu.pipeline_mode<synchronous>, transform_indices = @transform_5, window_bounds = array<i64: 20, 512>}, {pipeline_mode = #tpu.pipeline_mode<synchronous>, transform_indices = @transform_6, window_bounds = array<i64: 1, 512>}, {pipeline_mode = #tpu.pipeline_mode<synchronous>, transform_indices = @transform_7, window_bounds = array<i64: 512, 784>}, {pipeline_mode = #tpu.pipeline_mode<synchronous>, transform_indices = @transform_8, window_bounds = array<i64: 1, 784>}, {transform_indices = @transform_9, window_bounds = array<i64: 16, 20>}, {transform_indices = @transform_10, window_bounds = array<i64: 16, 784>}, {transform_indices = @transform_11, window_bounds = array<i64: 16, 256>}]} {
    %c0 = arith.constant 0 : index
    %c0_0 = arith.constant 0 : index
    %0 = vector.load %arg1[%c0, %c0_0] : memref<16x784xf32, #tpu.memory_space<vmem>>, vector<16x784xf32>
    %1 = arith.truncf %0 : vector<16x784xf32> to vector<16x784xbf16>
    %c0_1 = arith.constant 0 : index
    %c0_2 = arith.constant 0 : index
    %2 = vector.load %arg2[%c0_1, %c0_2] : memref<784x512xbf16, #tpu.memory_space<vmem>>, vector<784x512xbf16>
    %cst = arith.constant dense<0.000000e+00> : vector<16x512xf32>
    %3 = tpu.matmul %1, %2, %cst {dimension_numbers = #tpu.dot_dimension_numbers<[1], [0], [0], [1], [0, 0, 1, 1], [], []>} : vector<16x784xbf16>, vector<784x512xbf16>, vector<16x512xf32> -> vector<16x512xf32>
    %c0_3 = arith.constant 0 : index
    %c0_4 = arith.constant 0 : index
    %4 = vector.load %arg3[%c0_3, %c0_4] : memref<1x512xf32, #tpu.memory_space<vmem>>, vector<1x512xf32>
    %5 = vector.broadcast %4 : vector<1x512xf32> to vector<16x512xf32>
    %6 = arith.addf %3, %5 : vector<16x512xf32>
    %cst_5 = arith.constant 0.000000e+00 : f32
    %7 = vector.broadcast %cst_5 : f32 to vector<16x512xf32>
    %8 = arith.maximumf %6, %7 : vector<16x512xf32>
    %c0_6 = arith.constant 0 : index
    %c0_7 = arith.constant 0 : index
    %9 = vector.load %arg4[%c0_6, %c0_7] : memref<512x256xf32, #tpu.memory_space<vmem>>, vector<512x256xf32>
    %cst_8 = arith.constant dense<0.000000e+00> : vector<16x256xf32>
    %10 = tpu.matmul %8, %9, %cst_8 {dimension_numbers = #tpu.dot_dimension_numbers<[1], [0], [0], [1], [0, 0, 1, 1], [], []>} : vector<16x512xf32>, vector<512x256xf32>, vector<16x256xf32> -> vector<16x256xf32>
    %c0_9 = arith.constant 0 : index
    %c0_10 = arith.constant 0 : index
    %11 = vector.load %arg5[%c0_9, %c0_10] : memref<1x256xf32, #tpu.memory_space<vmem>>, vector<1x256xf32>
    %12 = vector.broadcast %11 : vector<1x256xf32> to vector<16x256xf32>
    %13 = arith.addf %10, %12 : vector<16x256xf32>
    %14 = vector.extract_strided_slice %13 {offsets = [0, 0], sizes = [16, 20], strides = [1, 1]} : vector<16x256xf32> to vector<16x20xf32>
    %15 = vector.extract_strided_slice %13 {offsets = [0, 128], sizes = [16, 20], strides = [1, 1]} : vector<16x256xf32> to vector<16x20xf32>
    %c0_11 = arith.constant 0 : index
    %c0_12 = arith.constant 0 : index
    %16 = vector.load %arg10[%c0_11, %c0_12] : memref<16x20xf32, #tpu.memory_space<vmem>>, vector<16x20xf32>
    %cst_13 = arith.constant 5.000000e-01 : f32
    %17 = vector.broadcast %cst_13 : f32 to vector<16x20xf32>
    %18 = arith.mulf %17, %15 : vector<16x20xf32>
    %19 = math.exp %18 : vector<16x20xf32>
    %20 = arith.mulf %16, %19 : vector<16x20xf32>
    %21 = arith.addf %20, %14 : vector<16x20xf32>
    %c0_14 = arith.constant 0 : index
    %c0_15 = arith.constant 0 : index
    %22 = vector.load %arg6[%c0_14, %c0_15] : memref<20x512xf32, #tpu.memory_space<vmem>>, vector<20x512xf32>
    %cst_16 = arith.constant dense<0.000000e+00> : vector<16x512xf32>
    %23 = tpu.matmul %21, %22, %cst_16 {dimension_numbers = #tpu.dot_dimension_numbers<[1], [0], [0], [1], [0, 0, 1, 1], [], []>} : vector<16x20xf32>, vector<20x512xf32>, vector<16x512xf32> -> vector<16x512xf32>
    %c0_17 = arith.constant 0 : index
    %c0_18 = arith.constant 0 : index
    %24 = vector.load %arg7[%c0_17, %c0_18] : memref<1x512xf32, #tpu.memory_space<vmem>>, vector<1x512xf32>
    %25 = vector.broadcast %24 : vector<1x512xf32> to vector<16x512xf32>
    %26 = arith.addf %23, %25 : vector<16x512xf32>
    %cst_19 = arith.constant 0.000000e+00 : f32
    %27 = vector.broadcast %cst_19 : f32 to vector<16x512xf32>
    %28 = arith.maximumf %26, %27 : vector<16x512xf32>
    %29 = arith.truncf %28 : vector<16x512xf32> to vector<16x512xbf16>
    %c0_20 = arith.constant 0 : index
    %c0_21 = arith.constant 0 : index
    %30 = vector.load %arg8[%c0_20, %c0_21] : memref<512x784xbf16, #tpu.memory_space<vmem>>, vector<512x784xbf16>
    %cst_22 = arith.constant dense<0.000000e+00> : vector<16x784xf32>
    %31 = tpu.matmul %29, %30, %cst_22 {dimension_numbers = #tpu.dot_dimension_numbers<[1], [0], [0], [1], [0, 0, 1, 1], [], []>} : vector<16x512xbf16>, vector<512x784xbf16>, vector<16x784xf32> -> vector<16x784xf32>
    %c0_23 = arith.constant 0 : index
    %c0_24 = arith.constant 0 : index
    %32 = vector.load %arg9[%c0_23, %c0_24] : memref<1x784xf32, #tpu.memory_space<vmem>>, vector<1x784xf32>
    %33 = vector.broadcast %32 : vector<1x784xf32> to vector<16x784xf32>
    %34 = arith.addf %31, %33 : vector<16x784xf32>
    %cst_25 = arith.constant 5.000000e-01 : f32
    %35 = vector.broadcast %cst_25 : f32 to vector<16x784xf32>
    %36 = arith.mulf %35, %34 : vector<16x784xf32>
    %37 = arith.truncf %36 : vector<16x784xf32> to vector<16x784xbf16>
    %38 = math.tanh %37 : vector<16x784xbf16>
    %cst_26 = arith.constant 5.000000e-01 : bf16
    %39 = vector.broadcast %cst_26 : bf16 to vector<16x784xbf16>
    %40 = arith.mulf %39, %38 : vector<16x784xbf16>
    %cst_27 = arith.constant 5.000000e-01 : bf16
    %41 = vector.broadcast %cst_27 : bf16 to vector<16x784xbf16>
    %42 = arith.addf %40, %41 : vector<16x784xbf16>
    %c0_28 = arith.constant 0 : index
    %c0_29 = arith.constant 0 : index
    %43 = vector.load %arg11[%c0_28, %c0_29] : memref<16x784xbf16, #tpu.memory_space<vmem>>, vector<16x784xbf16>
    tpu.vector_store %arg11[%c0_28, %c0_29], %42 {strides = array<i32>} : memref<16x784xbf16, #tpu.memory_space<vmem>>, vector<16x784xbf16>,
    %c0_30 = arith.constant 0 : index
    %c0_31 = arith.constant 0 : index
    %44 = vector.load %arg12[%c0_30, %c0_31] : memref<16x256xf32, #tpu.memory_space<vmem>>, vector<16x256xf32>
    tpu.vector_store %arg12[%c0_30, %c0_31], %13 {strides = array<i32>} : memref<16x256xf32, #tpu.memory_space<vmem>>, vector<16x256xf32>,
    return
  }
  func.func @transform_0(%arg0: i32) -> (i32, i32) {
    %c0_i32 = arith.constant 0 : i32
    %c0_i32_0 = arith.constant 0 : i32
    return %arg0, %c0_i32 : i32, i32
  }
  func.func @transform_1(%arg0: i32) -> (i32, i32) {
    %c0_i32 = arith.constant 0 : i32
    %c0_i32_0 = arith.constant 0 : i32
    %c0_i32_1 = arith.constant 0 : i32
    return %c0_i32, %c0_i32_0 : i32, i32
  }
  func.func @transform_2(%arg0: i32) -> (i32, i32) {
    %c0_i32 = arith.constant 0 : i32
    %c0_i32_0 = arith.constant 0 : i32
    %c0_i32_1 = arith.constant 0 : i32
    return %c0_i32, %c0_i32_0 : i32, i32
  }
  func.func @transform_3(%arg0: i32) -> (i32, i32) {
    %c0_i32 = arith.constant 0 : i32
    %c0_i32_0 = arith.constant 0 : i32
    %c0_i32_1 = arith.constant 0 : i32
    return %c0_i32, %c0_i32_0 : i32, i32
  }
  func.func @transform_4(%arg0: i32) -> (i32, i32) {
    %c0_i32 = arith.constant 0 : i32
    %c0_i32_0 = arith.constant 0 : i32
    %c0_i32_1 = arith.constant 0 : i32
    return %c0_i32, %c0_i32_0 : i32, i32
  }
  func.func @transform_5(%arg0: i32) -> (i32, i32) {
    %c0_i32 = arith.constant 0 : i32
    %c0_i32_0 = arith.constant 0 : i32
    %c0_i32_1 = arith.constant 0 : i32
    return %c0_i32, %c0_i32_0 : i32, i32
  }
  func.func @transform_6(%arg0: i32) -> (i32, i32) {
    %c0_i32 = arith.constant 0 : i32
    %c0_i32_0 = arith.constant 0 : i32
    %c0_i32_1 = arith.constant 0 : i32
    return %c0_i32, %c0_i32_0 : i32, i32
  }
  func.func @transform_7(%arg0: i32) -> (i32, i32) {
    %c0_i32 = arith.constant 0 : i32
    %c0_i32_0 = arith.constant 0 : i32
    %c0_i32_1 = arith.constant 0 : i32
    return %c0_i32, %c0_i32_0 : i32, i32
  }
  func.func @transform_8(%arg0: i32) -> (i32, i32) {
    %c0_i32 = arith.constant 0 : i32
    %c0_i32_0 = arith.constant 0 : i32
    %c0_i32_1 = arith.constant 0 : i32
    return %c0_i32, %c0_i32_0 : i32, i32
  }
  func.func @transform_9(%arg0: i32) -> (i32, i32) {
    %c0_i32 = arith.constant 0 : i32
    %c0_i32_0 = arith.constant 0 : i32
    return %arg0, %c0_i32 : i32, i32
  }
  func.func @transform_10(%arg0: i32) -> (i32, i32) {
    %c0_i32 = arith.constant 0 : i32
    %c0_i32_0 = arith.constant 0 : i32
    return %arg0, %c0_i32 : i32, i32
  }
  func.func @transform_11(%arg0: i32) -> (i32, i32) {
    %c0_i32 = arith.constant 0 : i32
    %c0_i32_0 = arith.constant 0 : i32
    return %arg0, %c0_i32 : i32, i32
  }
}

</mosaic_0001>

<bundles_post_ra>
// kernel: vae_forward.1
= control target key start
LH: loop header
LB: loop body
LE: loop exit
PB: predicated region body
PF: predicated region fallthrough
CT: control target
= control target key end

     0   :  { %vm1258_vm0 = vcmask 130048   ;;  %vm1961_vm1 = vcmask 1043456   ;;  %vm1954_vm2 = vcmask 162816   ;;  %vm4007_vm3 = vcmask 125952   ;;  %s7266_s1 = inlined_call_operand.vmem [shape: bf16[784,512], index: 1, kind: input, shape index: {}]   ;;  %s7267_s0 = inlined_call_operand.vmem [shape: f32[16,784], index: 0, kind: input, shape index: {}]   ;;  %s7268_s3 = inlined_call_operand.vmem [shape: f32[512,256], index: 3, kind: input, shape index: {}]   ;;  %s7269_s2 = inlined_call_operand.vmem [shape: f32[1,512], index: 2, kind: input, shape index: {}]   ;;  %s7270_s5 = inlined_call_operand.vmem [shape: f32[20,512], index: 5, kind: input, shape index: {}]   ;;  %s7271_s7 = inlined_call_operand.vmem [shape: bf16[512,784], index: 7, kind: input, shape index: {}]   ;;  %s7272_s4 = inlined_call_operand.vmem [shape: f32[1,256], index: 4, kind: input, shape index: {}]   ;;  %s7273_s11 = inlined_call_operand.vmem [shape: f32[16,256], index: 11, kind: output, shape index: {1}]   ;;  %s7274_s9 = inlined_call_operand.vmem [shape: f32[16,20], index: 9, kind: input, shape index: {}]   ;;  %s7275_s6 = inlined_call_operand.vmem [shape: f32[1,512], index: 6, kind: input, shape index: {}]   ;;  %s7276_s8 = inlined_call_operand.vmem [shape: f32[1,784], index: 8, kind: input, shape index: {}]   ;;  %s7277_s10 = inlined_call_operand.vmem [shape: bf16[16,784], index: 10, kind: output, shape index: {0}]  }
   0x1   :  { %v4709_v0 = vld [vmem:[%s7266_s1 + $0x4] ss:$16 sps:$4 sm:$0xff]   ;;  %v4711_v1 = vld [vmem:[%s7266_s1 + $0xc] ss:$16 sps:$4 sm:$0xff]   ;;  %v4713_v2 = vld [vmem:[%s7266_s1] ss:$16 sps:$4 sm:$0xff]  }
   0x2   :  { %1262 = vmatprep.subr.bf16.mxu0 %v4709_v0  ;;  %v4714_v3 = vld [vmem:[%s7266_s1 + $0x8] ss:$16 sps:$4 sm:$0xff]   ;;  %1434 = vmatprep.subr.bf16.mxu1 %v4711_v1  ;;  %v4715_v4 = vld [vmem:[%s7266_s1 + $0x24] ss:$16 sps:$4 sm:$0xff]   ;;  %v4717_v5 = vld [vmem:[%s7266_s1 + $0x2c] ss:$16 sps:$4 sm:$0xff]  }
   0x3   :  { %1263 = vmatpush1.bf16.msra.mxu0 %v4713_v2  ;;  %1435 = vmatpush1.bf16.msra.mxu1 %v4714_v3  ;;  %v4719_v6 = vld [vmem:[%s7266_s1 + $0x20] ss:$16 sps:$4 sm:$0xff]   ;;  %v4720_v7 = vld [vmem:[%s7266_s1 + $0x28] ss:$16 sps:$4 sm:$0xff]   ;;  %v4721_v8 = vld [vmem:[%s7266_s1 + $0x44] ss:$16 sps:$4 sm:$0xff]  }
   0x4   :  { %1264 = vmatprep.subr.bf16.mxu0 %v4715_v4  ;;  %1436 = vmatprep.subr.bf16.mxu1 %v4717_v5  ;;  %v4723_v9 = vld [vmem:[%s7266_s1 + $0x4c] ss:$16 sps:$4 sm:$0xff]   ;;  %v4725_v10 = vld [vmem:[%s7266_s1 + $0x40] ss:$16 sps:$4 sm:$0xff]   ;;  %v4726_v11 = vld [vmem:[%s7266_s1 + $0x48] ss:$16 sps:$4 sm:$0xff]  }
   0x5   :  { %v4727_v12 = vld [vmem:[%s7266_s1 + $0x64] ss:$16 sps:$4 sm:$0xff]   ;;  %v4729_v13 = vld [vmem:[%s7266_s1 + $0x6c] ss:$16 sps:$4 sm:$0xff]   ;;  %v4731_v14 = vld [vmem:[%s7266_s1 + $0x60] ss:$16 sps:$4 sm:$0xff]  }
   0x6   :  { %v4732_v15 = vld [vmem:[%s7266_s1 + $0x68] ss:$16 sps:$4 sm:$0xff]   ;;  %v4733_v16 = vld [vmem:[%s7266_s1 + $0x84] ss:$16 sps:$4 sm:$0xff]   ;;  %v4735_v17 = vld [vmem:[%s7266_s1 + $0x8c] ss:$16 sps:$4 sm:$0xff]  }
   0x7   :  { %1265 = vmatpush1.bf16.msra.mxu0 %v4719_v6  ;;  %1437 = vmatpush1.bf16.msra.mxu1 %v4720_v7  ;;  %v4737_v18 = vld [vmem:[%s7266_s1 + $0x80] ss:$16 sps:$4 sm:$0xff]   ;;  %v4738_v19 = vld [vmem:[%s7266_s1 + $0x88] ss:$16 sps:$4 sm:$0xff]   ;;  %v4739_v20 = vld [vmem:[%s7266_s1 + $0xa4] ss:$16 sps:$4 sm:$0xff]  }
   0x8   :  { %1266 = vmatprep.subr.bf16.mxu0 %v4721_v8  ;;  %1438 = vmatprep.subr.bf16.mxu1 %v4723_v9  ;;  %v4741_v21 = vld [vmem:[%s7266_s1 + $0xac] ss:$16 sps:$4 sm:$0xff]   ;;  %v4743_v22 = vld [vmem:[%s7266_s1 + $0xa0] ss:$16 sps:$4 sm:$0xff]   ;;  %v4744_v23 = vld [vmem:[%s7266_s1 + $0xa8] ss:$16 sps:$4 sm:$0xff]  }
   0x9   :  { %v4745_v24 = vld [vmem:[%s7266_s1 + $0xc4] ss:$16 sps:$4 sm:$0xff]   ;;  %v4747_v25 = vld [vmem:[%s7266_s1 + $0xcc] ss:$16 sps:$4 sm:$0xff]   ;;  %v4749_v26 = vld [vmem:[%s7266_s1 + $0xc0] ss:$16 sps:$4 sm:$0xff]  }
   0xa   :  { %v4750_v27 = vld [vmem:[%s7266_s1 + $0xc8] ss:$16 sps:$4 sm:$0xff]   ;;  %v4751_v28 = vld [vmem:[%s7266_s1 + $0xe4] ss:$16 sps:$4 sm:$0xff]   ;;  %v4753_v29 = vld [vmem:[%s7266_s1 + $0xec] ss:$16 sps:$4 sm:$0xff]  }
   0xb   :  { %1267 = vmatpush1.bf16.msra.mxu0 %v4725_v10  ;;  %1439 = vmatpush1.bf16.msra.mxu1 %v4726_v11  ;;  %v4755_v30 = vld [vmem:[%s7266_s1 + $0xe0] ss:$16 sps:$4 sm:$0xff]   ;;  %v4756_v31 = vld [vmem:[%s7266_s1 + $0xe8] ss:$16 sps:$4 sm:$0xff]   ;;  %v4757_v32 = vld [vmem:[%s7266_s1 + $0x104] ss:$16 sps:$4 sm:$0xff]  }
   0xc   :  { %1268 = vmatprep.subr.bf16.mxu0 %v4727_v12  ;;  %1440 = vmatprep.subr.bf16.mxu1 %v4729_v13  ;;  %v4759_v33 = vld [vmem:[%s7266_s1 + $0x10c] ss:$16 sps:$4 sm:$0xff]   ;;  %v4761_v34 = vld [vmem:[%s7266_s1 + $0x100] ss:$16 sps:$4 sm:$0xff]   ;;  %v4762_v35 = vld [vmem:[%s7266_s1 + $0x108] ss:$16 sps:$4 sm:$0xff]  }
   0xd   :  { %v4763_v36 = vld [vmem:[%s7266_s1 + $0x124] ss:$16 sps:$4 sm:$0xff]   ;;  %v4765_v37 = vld [vmem:[%s7266_s1 + $0x12c] ss:$16 sps:$4 sm:$0xff]   ;;  %v4767_v38 = vld [vmem:[%s7266_s1 + $0x120] ss:$16 sps:$4 sm:$0xff]  }
   0xe   :  { %v4768_v39 = vld [vmem:[%s7266_s1 + $0x128] ss:$16 sps:$4 sm:$0xff]   ;;  %v4769_v40 = vld [vmem:[%s7266_s1 + $0x144] ss:$16 sps:$4 sm:$0xff]   ;;  %v4771_v41 = vld [vmem:[%s7266_s1 + $0x14c] ss:$16 sps:$4 sm:$0xff]  }
   0xf   :  { %1269 = vmatpush1.bf16.msra.mxu0 %v4731_v14  ;;  %1441 = vmatpush1.bf16.msra.mxu1 %v4732_v15  ;;  %v4773_v42 = vld [vmem:[%s7266_s1 + $0x140] ss:$16 sps:$4 sm:$0xff]   ;;  %v4774_v43 = vld [vmem:[%s7266_s1 + $0x148] ss:$16 sps:$4 sm:$0xff]   ;;  %v4775_v44 = vld [vmem:[%s7266_s1 + $0x164] ss:$16 sps:$4 sm:$0xff]  }
  0x10   :  { %1270 = vmatprep.subr.bf16.mxu0 %v4733_v16  ;;  %1442 = vmatprep.subr.bf16.mxu1 %v4735_v17  ;;  %v4777_v45 = vld [vmem:[%s7266_s1 + $0x16c] ss:$16 sps:$4 sm:$0xff]   ;;  %v47_v47 = vld [vmem:[%s7267_s0 + $0x40] sm:$0xff]  ;;  %v4780_v49 = vld [vmem:[%s7266_s1 + $0x168] ss:$16 sps:$4 sm:$0xff]  }
  0x11   :  { %v40_v46 = vld [vmem:[%s7267_s0 + $0x8] sm:$0xff]  ;;  %v4779_v48 = vld [vmem:[%s7266_s1 + $0x160] ss:$16 sps:$4 sm:$0xff]   ;;  %v4781_v51 = vld [vmem:[%s7266_s1 + $0x184] ss:$16 sps:$4 sm:$0xff]  }
  0x12   :  { %v54_v50 = vpack.c.bf16 %v47_v47, %v40_v46  ;;  %v4783_v52 = vld [vmem:[%s7266_s1 + $0x18c] ss:$16 sps:$4 sm:$0xff]   ;;  %v4785_v53 = vld [vmem:[%s7266_s1 + $0x180] ss:$16 sps:$4 sm:$0xff]   ;;  %v4786_v54 = vld [vmem:[%s7266_s1 + $0x188] ss:$16 sps:$4 sm:$0xff]  }
  0x13   :  { %1271 = vmatpush1.bf16.msra.mxu0 %v4737_v18  ;;  %1443 = vmatpush1.bf16.msra.mxu1 %v4738_v19  ;;  %v4787_v55 = vld [vmem:[%s7266_s1 + $0x1a4] ss:$16 sps:$4 sm:$0xff]   ;;  %v4789_v56 = vld [vmem:[%s7266_s1 + $0x1ac] ss:$16 sps:$4 sm:$0xff]   ;;  %v4791_v57 = vld [vmem:[%s7266_s1 + $0x1a0] ss:$16 sps:$4 sm:$0xff]  }
  0x14   :  { %1272 = vmatprep.subr.bf16.mxu0 %v4739_v20  ;;  %1444 = vmatprep.subr.bf16.mxu1 %v4741_v21  ;;  %v4792_v58 = vld [vmem:[%s7266_s1 + $0x1a8] ss:$16 sps:$4 sm:$0xff]   ;;  %v4793_v59 = vld [vmem:[%s7266_s1 + $0x1c4] ss:$16 sps:$4 sm:$0xff]   ;;  %v4795_v60 = vld [vmem:[%s7266_s1 + $0x1cc] ss:$16 sps:$4 sm:$0xff]  }
  0x15   :  { %1294 = vmatprep.mubr.bf16.mxu0 %v54_v50  ;;  %1466 = vmatprep.mubr.bf16.mxu1 %v54_v50  ;;  %v4797_v61 = vld [vmem:[%s7266_s1 + $0x1c0] ss:$16 sps:$4 sm:$0xff]   ;;  %v4798_v62 = vld [vmem:[%s7266_s1 + $0x1c8] ss:$16 sps:$4 sm:$0xff]   ;;  %v4799_v63 = vld [vmem:[%s7266_s1 + $0x1e4] ss:$16 sps:$4 sm:$0xff]  }
  0x16   :  { %v4801_v0 = vld [vmem:[%s7266_s1 + $0x1ec] ss:$16 sps:$4 sm:$0xff]   ;;  %v4803_v1 = vld [vmem:[%s7266_s1 + $0x1e0] ss:$16 sps:$4 sm:$0xff]   ;;  %v4804_v2 = vld [vmem:[%s7266_s1 + $0x1e8] ss:$16 sps:$4 sm:$0xff]  }
  0x17   :  { %1273 = vmatpush1.bf16.msra.mxu0 %v4743_v22  ;;  %1445 = vmatpush1.bf16.msra.mxu1 %v4744_v23  ;;  %v4807_v3 = vld [vmem:[%s7266_s1 + $0x204] ss:$16 sps:$4 sm:$0xff]   ;;  %v46_v5 = vld [vmem:[%s7267_s0 + $0x38] sm:$0xff]  ;;  %v4805_v7 = vld [vmem:[%s7266_s1 + $0x200] ss:$16 sps:$4 sm:$0xff]  }
  0x18   :  { %1274 = vmatprep.subr.bf16.mxu0 %v4745_v24  ;;  %1446 = vmatprep.subr.bf16.mxu1 %v4747_v25  ;;  %v39_v4 = vld [vmem:[%s7267_s0] sm:$0xff]  ;;  %v4810_v6 = vld [vmem:[%s7266_s1 + $0x20c] ss:$16 sps:$4 sm:$0xff]   ;;  %v4808_v8 = vld [vmem:[%s7266_s1 + $0x208] ss:$16 sps:$4 sm:$0xff]  }
  0x19   :  { %v53_v9 = vpack.c.bf16 %v46_v5, %v39_v4  ;;  %v4813_v10 = vld [vmem:[%s7266_s1 + $0x224] ss:$16 sps:$4 sm:$0xff]   ;;  %v4816_v11 = vld [vmem:[%s7266_s1 + $0x22c] ss:$16 sps:$4 sm:$0xff]   ;;  %v4811_v12 = vld [vmem:[%s7266_s1 + $0x220] ss:$16 sps:$4 sm:$0xff]  }
  0x1a   :  { %v4814_v13 = vld [vmem:[%s7266_s1 + $0x228] ss:$16 sps:$4 sm:$0xff]   ;;  %v4819_v14 = vld [vmem:[%s7266_s1 + $0x244] ss:$16 sps:$4 sm:$0xff]   ;;  %v4822_v15 = vld [vmem:[%s7266_s1 + $0x24c] ss:$16 sps:$4 sm:$0xff]  }
  0x1b   :  { %1275 = vmatpush1.bf16.msra.mxu0 %v4749_v26  ;;  %1447 = vmatpush1.bf16.msra.mxu1 %v4750_v27  ;;  %v4817_v16 = vld [vmem:[%s7266_s1 + $0x240] ss:$16 sps:$4 sm:$0xff]   ;;  %v4820_v17 = vld [vmem:[%s7266_s1 + $0x248] ss:$16 sps:$4 sm:$0xff]   ;;  %v4825_v18 = vld [vmem:[%s7266_s1 + $0x264] ss:$16 sps:$4 sm:$0xff]  }
  0x1c   :  { %1276 = vmatprep.subr.bf16.mxu0 %v4751_v28  ;;  %1448 = vmatprep.subr.bf16.mxu1 %v4753_v29  ;;  %v4828_v19 = vld [vmem:[%s7266_s1 + $0x26c] ss:$16 sps:$4 sm:$0xff]   ;;  %v4823_v20 = vld [vmem:[%s7266_s1 + $0x260] ss:$16 sps:$4 sm:$0xff]   ;;  %v4826_v21 = vld [vmem:[%s7266_s1 + $0x268] ss:$16 sps:$4 sm:$0xff]  }
  0x1d   :  { %v4831_v22 = vld [vmem:[%s7266_s1 + $0x284] ss:$16 sps:$4 sm:$0xff]   ;;  %v4834_v23 = vld [vmem:[%s7266_s1 + $0x28c] ss:$16 sps:$4 sm:$0xff]   ;;  %v4829_v24 = vld [vmem:[%s7266_s1 + $0x280] ss:$16 sps:$4 sm:$0xff]  }
  0x1e   :  { %v4832_v25 = vld [vmem:[%s7266_s1 + $0x288] ss:$16 sps:$4 sm:$0xff]   ;;  %v4837_v26 = vld [vmem:[%s7266_s1 + $0x2a4] ss:$16 sps:$4 sm:$0xff]   ;;  %v4840_v27 = vld [vmem:[%s7266_s1 + $0x2ac] ss:$16 sps:$4 sm:$0xff]  }
  0x1f   :  { %1277 = vmatpush1.bf16.msra.mxu0 %v4755_v30  ;;  %1449 = vmatpush1.bf16.msra.mxu1 %v4756_v31  ;;  %v4835_v28 = vld [vmem:[%s7266_s1 + $0x2a0] ss:$16 sps:$4 sm:$0xff]   ;;  %v4838_v29 = vld [vmem:[%s7266_s1 + $0x2a8] ss:$16 sps:$4 sm:$0xff]   ;;  %v4843_v30 = vld [vmem:[%s7266_s1 + $0x2c4] ss:$16 sps:$4 sm:$0xff]  }
  0x20   :  { %1278 = vmatprep.subr.bf16.mxu0 %v4757_v32  ;;  %1450 = vmatprep.subr.bf16.mxu1 %v4759_v33  ;;  %v4846_v31 = vld [vmem:[%s7266_s1 + $0x2cc] ss:$16 sps:$4 sm:$0xff]   ;;  %v49_v33 = vld [vmem:[%s7267_s0 + $0x50] sm:$0xff]  ;;  %v4892_v4 = vld [vmem:[%s7266_s1 + $0x3c8] ss:$16 sps:$4 sm:$0xff]  }
  0x21   :  { %v42_v32 = vld [vmem:[%s7267_s0 + $0x18] sm:$0xff]  ;;  %v4859_v47 = vld [vmem:[%s7266_s1 + $0x320] ss:$16 sps:$4 sm:$0xff]   ;;  %v4897_v5 = vld [vmem:[%s7266_s1 + $0x3e4] ss:$16 sps:$4 sm:$0xff]  }
  0x22   :  { %v4864_v46 = vld [vmem:[%s7266_s1 + $0x32c] ss:$16 sps:$4 sm:$0xff]  }
  0x23   :  { %1279 = vmatpush1.bf16.msra.mxu0 %v4761_v34  ;;  %1451 = vmatpush1.bf16.msra.mxu1 %v4762_v35  ;;  %v4841_v34 = vld [vmem:[%s7266_s1 + $0x2c0] ss:$16 sps:$4 sm:$0xff]   ;;  %v4844_v35 = vld [vmem:[%s7266_s1 + $0x2c8] ss:$16 sps:$4 sm:$0xff]   ;;  %v4870_v50 = vld [vmem:[%s7266_s1 + $0x34c] ss:$16 sps:$4 sm:$0xff]  }
  0x24   :  { %1280 = vmatprep.subr.bf16.mxu0 %v4763_v36  ;;  %1452 = vmatprep.subr.bf16.mxu1 %v4765_v37  ;;  %v56_v36 = vpack.c.bf16 %v49_v33, %v42_v32  ;;  %v4849_v37 = vld [vmem:[%s7266_s1 + $0x2e4] ss:$16 sps:$4 sm:$0xff]   ;;  %v4930_v32 = vld [vmem:[%s7266_s1 + $0x48c] ss:$16 sps:$4 sm:$0xff]   ;;  %v4925_v33 = vld [vmem:[%s7266_s1 + $0x480] ss:$16 sps:$4 sm:$0xff]  }
  0x27   :  { %1281 = vmatpush1.bf16.msra.mxu0 %v4767_v38  ;;  %1453 = vmatpush1.bf16.msra.mxu1 %v4768_v39  ;;  %v4852_v38 = vld [vmem:[%s7266_s1 + $0x2ec] ss:$16 sps:$4 sm:$0xff]   ;;  %v4847_v39 = vld [vmem:[%s7266_s1 + $0x2e0] ss:$16 sps:$4 sm:$0xff]  }
  0x28   :  { %1282 = vmatprep.subr.bf16.mxu0 %v4769_v40  ;;  %1454 = vmatprep.subr.bf16.mxu1 %v4771_v41  ;;  %v4850_v40 = vld [vmem:[%s7266_s1 + $0x2e8] ss:$16 sps:$4 sm:$0xff]   ;;  %v4855_v41 = vld [vmem:[%s7266_s1 + $0x304] ss:$16 sps:$4 sm:$0xff]  }
  0x2b   :  { %1283 = vmatpush1.bf16.msra.mxu0 %v4773_v42  ;;  %1455 = vmatpush1.bf16.msra.mxu1 %v4774_v43  ;;  %v4858_v42 = vld [vmem:[%s7266_s1 + $0x30c] ss:$16 sps:$4 sm:$0xff]   ;;  %v4853_v43 = vld [vmem:[%s7266_s1 + $0x300] ss:$16 sps:$4 sm:$0xff]  }
  0x2c   :  { %1284 = vmatprep.subr.bf16.mxu0 %v4775_v44  ;;  %1456 = vmatprep.subr.bf16.mxu1 %v4777_v45  ;;  %v4856_v44 = vld [vmem:[%s7266_s1 + $0x308] ss:$16 sps:$4 sm:$0xff]   ;;  %v4861_v45 = vld [vmem:[%s7266_s1 + $0x324] ss:$16 sps:$4 sm:$0xff]  }
  0x2f   :  { %1285 = vmatpush1.bf16.msra.mxu0 %v4779_v48  ;;  %1457 = vmatpush1.bf16.msra.mxu1 %v4780_v49  ;;  %v4862_v48 = vld [vmem:[%s7266_s1 + $0x328] ss:$16 sps:$4 sm:$0xff]   ;;  %v4867_v49 = vld [vmem:[%s7266_s1 + $0x344] ss:$16 sps:$4 sm:$0xff]  }
  0x30   :  { %1286 = vmatprep.subr.bf16.mxu0 %v4781_v51  ;;  %1458 = vmatprep.subr.bf16.mxu1 %v4783_v52  ;;  %v4865_v51 = vld [vmem:[%s7266_s1 + $0x340] ss:$16 sps:$4 sm:$0xff]   ;;  %v4868_v52 = vld [vmem:[%s7266_s1 + $0x348] ss:$16 sps:$4 sm:$0xff]  }
  0x33   :  { %1287 = vmatpush1.bf16.msra.mxu0 %v4785_v53  ;;  %1459 = vmatpush1.bf16.msra.mxu1 %v4786_v54  ;;  %v4873_v53 = vld [vmem:[%s7266_s1 + $0x364] ss:$16 sps:$4 sm:$0xff]   ;;  %v4876_v54 = vld [vmem:[%s7266_s1 + $0x36c] ss:$16 sps:$4 sm:$0xff]  }
  0x34   :  { %1288 = vmatprep.subr.bf16.mxu0 %v4787_v55  ;;  %1460 = vmatprep.subr.bf16.mxu1 %v4789_v56  ;;  %v4871_v55 = vld [vmem:[%s7266_s1 + $0x360] ss:$16 sps:$4 sm:$0xff]   ;;  %v4874_v56 = vld [vmem:[%s7266_s1 + $0x368] ss:$16 sps:$4 sm:$0xff]  }
  0x37   :  { %1289 = vmatpush1.bf16.msra.mxu0 %v4791_v57  ;;  %1461 = vmatpush1.bf16.msra.mxu1 %v4792_v58  ;;  %v4879_v57 = vld [vmem:[%s7266_s1 + $0x384] ss:$16 sps:$4 sm:$0xff]   ;;  %v4882_v58 = vld [vmem:[%s7266_s1 + $0x38c] ss:$16 sps:$4 sm:$0xff]  }
  0x38   :  { %1290 = vmatprep.subr.bf16.mxu0 %v4793_v59  ;;  %1462 = vmatprep.subr.bf16.mxu1 %v4795_v60  ;;  %v4877_v59 = vld [vmem:[%s7266_s1 + $0x380] ss:$16 sps:$4 sm:$0xff]   ;;  %v4880_v60 = vld [vmem:[%s7266_s1 + $0x388] ss:$16 sps:$4 sm:$0xff]  }
  0x3b   :  { %1291 = vmatpush1.bf16.msra.mxu0 %v4797_v61  ;;  %1463 = vmatpush1.bf16.msra.mxu1 %v4798_v62  ;;  %v4885_v61 = vld [vmem:[%s7266_s1 + $0x3a4] ss:$16 sps:$4 sm:$0xff]   ;;  %v4888_v62 = vld [vmem:[%s7266_s1 + $0x3ac] ss:$16 sps:$4 sm:$0xff]  }
  0x3c   :  { %1292 = vmatprep.subr.bf16.mxu0 %v4799_v63  ;;  %1464 = vmatprep.subr.bf16.mxu1 %v4801_v0  ;;  %v4883_v63 = vld [vmem:[%s7266_s1 + $0x3a0] ss:$16 sps:$4 sm:$0xff]   ;;  %v4886_v0 = vld [vmem:[%s7266_s1 + $0x3a8] ss:$16 sps:$4 sm:$0xff]  }
  0x3f   :  { %1293 = vmatpush1.bf16.msra.mxu0 %v4803_v1  ;;  %1465 = vmatpush1.bf16.msra.mxu1 %v4804_v2  ;;  %v4891_v1 = vld [vmem:[%s7266_s1 + $0x3c4] ss:$16 sps:$4 sm:$0xff]   ;;  %v4894_v2 = vld [vmem:[%s7266_s1 + $0x3cc] ss:$16 sps:$4 sm:$0xff]  }
  0x40   :  { %1305 = vmatprep.subr.bf16.mxu0 %v4807_v3  ;;  %1477 = vmatprep.subr.bf16.mxu1 %v4810_v6  ;;  %v4889_v3 = vld [vmem:[%s7266_s1 + $0x3c0] ss:$16 sps:$4 sm:$0xff]   ;;  %v4900_v6 = vld [vmem:[%s7266_s1 + $0x3ec] ss:$16 sps:$4 sm:$0xff]  }
  0x42   :  { %1295 = vmatmul.mubr.bf16.vlgmr.msra.gmra.mrb[0].mxu0 %v53_v9  ;;  %1467 = vmatmul.mubr.bf16.vlgmr.msra.gmra.mrb[0].mxu1 %v53_v9  ;;  %v4903_v9 = vld [vmem:[%s7266_s1 + $0x404] ss:$16 sps:$4 sm:$0xff]  }
  0x43   :  { %1306 = vmatpush1.bf16.msra.mxu0 %v4805_v7  ;;  %1478 = vmatpush1.bf16.msra.mxu1 %v4808_v8  ;;  %v4895_v7 = vld [vmem:[%s7266_s1 + $0x3e0] ss:$16 sps:$4 sm:$0xff]   ;;  %v4898_v8 = vld [vmem:[%s7266_s1 + $0x3e8] ss:$16 sps:$4 sm:$0xff]  }
  0x44   :  { %1307 = vmatprep.subr.bf16.mxu0 %v4813_v10  ;;  %1479 = vmatprep.subr.bf16.mxu1 %v4816_v11  ;;  %v41_v10 = vld [vmem:[%s7267_s0 + $0x10] sm:$0xff]  ;;  %v48_v11 = vld [vmem:[%s7267_s0 + $0x48] sm:$0xff] }
  0x45   :  { %1337 = vmatprep.mubr.bf16.mxu0 %v56_v36  ;;  %1509 = vmatprep.mubr.bf16.mxu1 %v56_v36  ;;  %v4936_v36 = vld [vmem:[%s7266_s1 + $0x4ac] ss:$16 sps:$4 sm:$0xff]  }
  0x47   :  { %1308 = vmatpush1.bf16.msra.mxu0 %v4811_v12  ;;  %1480 = vmatpush1.bf16.msra.mxu1 %v4814_v13  ;;  %v4906_v12 = vld [vmem:[%s7266_s1 + $0x40c] ss:$16 sps:$4 sm:$0xff]   ;;  %v4901_v13 = vld [vmem:[%s7266_s1 + $0x400] ss:$16 sps:$4 sm:$0xff]  }
  0x48   :  { %1309 = vmatprep.subr.bf16.mxu0 %v4819_v14  ;;  %1481 = vmatprep.subr.bf16.mxu1 %v4822_v15  ;;  %v4904_v14 = vld [vmem:[%s7266_s1 + $0x408] ss:$16 sps:$4 sm:$0xff]   ;;  %v55_v15 = vpack.c.bf16 %v48_v11, %v41_v10  ;;  %v4993_v11 = vld [vmem:[%s7266_s1 + $0x5e4] ss:$16 sps:$4 sm:$0xff]  }
  0x49   :  { %v4988_v10 = vld [vmem:[%s7266_s1 + $0x5c8] ss:$16 sps:$4 sm:$0xff]  }
  0x4b   :  { %1310 = vmatpush1.bf16.msra.mxu0 %v4817_v16  ;;  %1482 = vmatpush1.bf16.msra.mxu1 %v4820_v17  ;;  %v4909_v16 = vld [vmem:[%s7266_s1 + $0x424] ss:$16 sps:$4 sm:$0xff]   ;;  %v4912_v17 = vld [vmem:[%s7266_s1 + $0x42c] ss:$16 sps:$4 sm:$0xff]  }
  0x4c   :  { %1311 = vmatprep.subr.bf16.mxu0 %v4825_v18  ;;  %1483 = vmatprep.subr.bf16.mxu1 %v4828_v19  ;;  %v44_v18 = vld [vmem:[%s7267_s0 + $0x28] sm:$0xff]  ;;  %v4907_v19 = vld [vmem:[%s7266_s1 + $0x420] ss:$16 sps:$4 sm:$0xff]  }
  0x4f   :  { %1312 = vmatpush1.bf16.msra.mxu0 %v4823_v20  ;;  %1484 = vmatpush1.bf16.msra.mxu1 %v4826_v21  ;;  %v51_v20 = vld [vmem:[%s7267_s0 + $0x60] sm:$0xff]  ;;  %v4910_v21 = vld [vmem:[%s7266_s1 + $0x428] ss:$16 sps:$4 sm:$0xff]  }
  0x50   :  { %1313 = vmatprep.subr.bf16.mxu0 %v4831_v22  ;;  %1485 = vmatprep.subr.bf16.mxu1 %v4834_v23  ;;  %v58_v22 = vpack.c.bf16 %v51_v20, %v44_v18  ;;  %v4915_v23 = vld [vmem:[%s7266_s1 + $0x444] ss:$16 sps:$4 sm:$0xff]   ;;  %v5002_v20 = vld [vmem:[%s7266_s1 + $0x60c] ss:$16 sps:$4 sm:$0xff]  }
  0x53   :  { %1314 = vmatpush1.bf16.msra.mxu0 %v4829_v24  ;;  %1486 = vmatpush1.bf16.msra.mxu1 %v4832_v25  ;;  %v4918_v24 = vld [vmem:[%s7266_s1 + $0x44c] ss:$16 sps:$4 sm:$0xff]   ;;  %v4913_v25 = vld [vmem:[%s7266_s1 + $0x440] ss:$16 sps:$4 sm:$0xff]  }
  0x54   :  { %1315 = vmatprep.subr.bf16.mxu0 %v4837_v26  ;;  %1487 = vmatprep.subr.bf16.mxu1 %v4840_v27  ;;  %v4916_v26 = vld [vmem:[%s7266_s1 + $0x448] ss:$16 sps:$4 sm:$0xff]   ;;  %v4921_v27 = vld [vmem:[%s7266_s1 + $0x464] ss:$16 sps:$4 sm:$0xff]  }
  0x57   :  { %1316 = vmatpush1.bf16.msra.mxu0 %v4835_v28  ;;  %1488 = vmatpush1.bf16.msra.mxu1 %v4838_v29  ;;  %v4924_v28 = vld [vmem:[%s7266_s1 + $0x46c] ss:$16 sps:$4 sm:$0xff]   ;;  %v4919_v29 = vld [vmem:[%s7266_s1 + $0x460] ss:$16 sps:$4 sm:$0xff]  }
  0x58   :  { %1317 = vmatprep.subr.bf16.mxu0 %v4843_v30  ;;  %1489 = vmatprep.subr.bf16.mxu1 %v4846_v31  ;;  %v4922_v30 = vld [vmem:[%s7266_s1 + $0x468] ss:$16 sps:$4 sm:$0xff]   ;;  %v4927_v31 = vld [vmem:[%s7266_s1 + $0x484] ss:$16 sps:$4 sm:$0xff]  }
  0x5b   :  { %1318 = vmatpush1.bf16.msra.mxu0 %v4841_v34  ;;  %1490 = vmatpush1.bf16.msra.mxu1 %v4844_v35  ;;  %v4928_v34 = vld [vmem:[%s7266_s1 + $0x488] ss:$16 sps:$4 sm:$0xff]   ;;  %v4933_v35 = vld [vmem:[%s7266_s1 + $0x4a4] ss:$16 sps:$4 sm:$0xff]  }
  0x5c   :  { %1319 = vmatprep.subr.bf16.mxu0 %v4849_v37  ;;  %1491 = vmatprep.subr.bf16.mxu1 %v4852_v38  ;;  %v4931_v37 = vld [vmem:[%s7266_s1 + $0x4a0] ss:$16 sps:$4 sm:$0xff]   ;;  %v4934_v38 = vld [vmem:[%s7266_s1 + $0x4a8] ss:$16 sps:$4 sm:$0xff]  }
  0x5f   :  { %1320 = vmatpush1.bf16.msra.mxu0 %v4847_v39  ;;  %1492 = vmatpush1.bf16.msra.mxu1 %v4850_v40  ;;  %v4939_v39 = vld [vmem:[%s7266_s1 + $0x4c4] ss:$16 sps:$4 sm:$0xff]   ;;  %v4942_v40 = vld [vmem:[%s7266_s1 + $0x4cc] ss:$16 sps:$4 sm:$0xff]  }
  0x60   :  { %1321 = vmatprep.subr.bf16.mxu0 %v4855_v41  ;;  %1493 = vmatprep.subr.bf16.mxu1 %v4858_v42  ;;  %v4937_v41 = vld [vmem:[%s7266_s1 + $0x4c0] ss:$16 sps:$4 sm:$0xff]   ;;  %v4940_v42 = vld [vmem:[%s7266_s1 + $0x4c8] ss:$16 sps:$4 sm:$0xff]  }
  0x63   :  { %1322 = vmatpush1.bf16.msra.mxu0 %v4853_v43  ;;  %1494 = vmatpush1.bf16.msra.mxu1 %v4856_v44  ;;  %v4945_v43 = vld [vmem:[%s7266_s1 + $0x4e4] ss:$16 sps:$4 sm:$0xff]   ;;  %v4948_v44 = vld [vmem:[%s7266_s1 + $0x4ec] ss:$16 sps:$4 sm:$0xff]  }
  0x64   :  { %1323 = vmatprep.subr.bf16.mxu0 %v4861_v45  ;;  %1495 = vmatprep.subr.bf16.mxu1 %v4864_v46  ;;  %v4943_v45 = vld [vmem:[%s7266_s1 + $0x4e0] ss:$16 sps:$4 sm:$0xff]   ;;  %v4946_v46 = vld [vmem:[%s7266_s1 + $0x4e8] ss:$16 sps:$4 sm:$0xff]  }
  0x67   :  { %1324 = vmatpush1.bf16.msra.mxu0 %v4859_v47  ;;  %1496 = vmatpush1.bf16.msra.mxu1 %v4862_v48  ;;  %v4951_v47 = vld [vmem:[%s7266_s1 + $0x504] ss:$16 sps:$4 sm:$0xff]   ;;  %v4954_v48 = vld [vmem:[%s7266_s1 + $0x50c] ss:$16 sps:$4 sm:$0xff]  }
  0x68   :  { %1325 = vmatprep.subr.bf16.mxu0 %v4867_v49  ;;  %1497 = vmatprep.subr.bf16.mxu1 %v4870_v50  ;;  %v4949_v49 = vld [vmem:[%s7266_s1 + $0x500] ss:$16 sps:$4 sm:$0xff]   ;;  %v4952_v50 = vld [vmem:[%s7266_s1 + $0x508] ss:$16 sps:$4 sm:$0xff]  }
  0x6b   :  { %1326 = vmatpush1.bf16.msra.mxu0 %v4865_v51  ;;  %1498 = vmatpush1.bf16.msra.mxu1 %v4868_v52  ;;  %v4957_v51 = vld [vmem:[%s7266_s1 + $0x524] ss:$16 sps:$4 sm:$0xff]   ;;  %v4960_v52 = vld [vmem:[%s7266_s1 + $0x52c] ss:$16 sps:$4 sm:$0xff]  }
  0x6c   :  { %1327 = vmatprep.subr.bf16.mxu0 %v4873_v53  ;;  %1499 = vmatprep.subr.bf16.mxu1 %v4876_v54  ;;  %v4955_v53 = vld [vmem:[%s7266_s1 + $0x520] ss:$16 sps:$4 sm:$0xff]   ;;  %v4958_v54 = vld [vmem:[%s7266_s1 + $0x528] ss:$16 sps:$4 sm:$0xff]  }
  0x6f   :  { %1328 = vmatpush1.bf16.msra.mxu0 %v4871_v55  ;;  %1500 = vmatpush1.bf16.msra.mxu1 %v4874_v56  ;;  %v4963_v55 = vld [vmem:[%s7266_s1 + $0x544] ss:$16 sps:$4 sm:$0xff]   ;;  %v4966_v56 = vld [vmem:[%s7266_s1 + $0x54c] ss:$16 sps:$4 sm:$0xff]  }
  0x70   :  { %1329 = vmatprep.subr.bf16.mxu0 %v4879_v57  ;;  %1501 = vmatprep.subr.bf16.mxu1 %v4882_v58  ;;  %v4961_v57 = vld [vmem:[%s7266_s1 + $0x540] ss:$16 sps:$4 sm:$0xff]   ;;  %v4964_v58 = vld [vmem:[%s7266_s1 + $0x548] ss:$16 sps:$4 sm:$0xff]  }
  0x73   :  { %1330 = vmatpush1.bf16.msra.mxu0 %v4877_v59  ;;  %1502 = vmatpush1.bf16.msra.mxu1 %v4880_v60  ;;  %v4969_v59 = vld [vmem:[%s7266_s1 + $0x564] ss:$16 sps:$4 sm:$0xff]   ;;  %v4972_v60 = vld [vmem:[%s7266_s1 + $0x56c] ss:$16 sps:$4 sm:$0xff]  }
  0x74   :  { %1331 = vmatprep.subr.bf16.mxu0 %v4885_v61  ;;  %1503 = vmatprep.subr.bf16.mxu1 %v4888_v62  ;;  %v4967_v61 = vld [vmem:[%s7266_s1 + $0x560] ss:$16 sps:$4 sm:$0xff]   ;;  %v4970_v62 = vld [vmem:[%s7266_s1 + $0x568] ss:$16 sps:$4 sm:$0xff]  }
  0x77   :  { %1332 = vmatpush1.bf16.msra.mxu0 %v4883_v63  ;;  %1504 = vmatpush1.bf16.msra.mxu1 %v4886_v0  ;;  %v4975_v63 = vld [vmem:[%s7266_s1 + $0x584] ss:$16 sps:$4 sm:$0xff]   ;;  %v4978_v0 = vld [vmem:[%s7266_s1 + $0x58c] ss:$16 sps:$4 sm:$0xff]  }
  0x78   :  { %1333 = vmatprep.subr.bf16.mxu0 %v4891_v1  ;;  %1505 = vmatprep.subr.bf16.mxu1 %v4894_v2  ;;  %v4973_v1 = vld [vmem:[%s7266_s1 + $0x580] ss:$16 sps:$4 sm:$0xff]   ;;  %v4976_v2 = vld [vmem:[%s7266_s1 + $0x588] ss:$16 sps:$4 sm:$0xff]  }
  0x7b   :  { %1334 = vmatpush1.bf16.msra.mxu0 %v4889_v3  ;;  %1506 = vmatpush1.bf16.msra.mxu1 %v4892_v4  ;;  %v4981_v3 = vld [vmem:[%s7266_s1 + $0x5a4] ss:$16 sps:$4 sm:$0xff]   ;;  %v4984_v4 = vld [vmem:[%s7266_s1 + $0x5ac] ss:$16 sps:$4 sm:$0xff]  }
  0x7c   :  { %1335 = vmatprep.subr.bf16.mxu0 %v4897_v5  ;;  %1507 = vmatprep.subr.bf16.mxu1 %v4900_v6  ;;  %v4979_v5 = vld [vmem:[%s7266_s1 + $0x5a0] ss:$16 sps:$4 sm:$0xff]   ;;  %v4982_v6 = vld [vmem:[%s7266_s1 + $0x5a8] ss:$16 sps:$4 sm:$0xff]  }
  0x7f   :  { %1336 = vmatpush1.bf16.msra.mxu0 %v4895_v7  ;;  %1508 = vmatpush1.bf16.msra.mxu1 %v4898_v8  ;;  %v4987_v7 = vld [vmem:[%s7266_s1 + $0x5c4] ss:$16 sps:$4 sm:$0xff]   ;;  %v4990_v8 = vld [vmem:[%s7266_s1 + $0x5cc] ss:$16 sps:$4 sm:$0xff]  }
  0x80   :  { %1348 = vmatprep.subr.bf16.mxu0 %v4903_v9  ;;  %1520 = vmatprep.subr.bf16.mxu1 %v4906_v12  ;;  %v4985_v9 = vld [vmem:[%s7266_s1 + $0x5c0] ss:$16 sps:$4 sm:$0xff]   ;;  %v4996_v12 = vld [vmem:[%s7266_s1 + $0x5ec] ss:$16 sps:$4 sm:$0xff]  }
  0x82   :  { %1338 = vmatmul.mubr.bf16.vlgmr.msra.gmra.mrb[0].mxu0 %v55_v15  ;;  %1510 = vmatmul.mubr.bf16.vlgmr.msra.gmra.mrb[0].mxu1 %v55_v15  ;;  %v43_v15 = vld [vmem:[%s7267_s0 + $0x20] sm:$0xff] }
  0x83   :  { %1349 = vmatpush1.bf16.msra.mxu0 %v4901_v13  ;;  %1521 = vmatpush1.bf16.msra.mxu1 %v4904_v14  ;;  %v4991_v13 = vld [vmem:[%s7266_s1 + $0x5e0] ss:$16 sps:$4 sm:$0xff]   ;;  %v4994_v14 = vld [vmem:[%s7266_s1 + $0x5e8] ss:$16 sps:$4 sm:$0xff]  }
  0x84   :  { %1350 = vmatprep.subr.bf16.mxu0 %v4909_v16  ;;  %1522 = vmatprep.subr.bf16.mxu1 %v4912_v17  ;;  %v50_v16 = vld [vmem:[%s7267_s0 + $0x58] sm:$0xff]  ;;  %v4999_v17 = vld [vmem:[%s7266_s1 + $0x604] ss:$16 sps:$4 sm:$0xff]  }
  0x85   :  { %1380 = vmatprep.mubr.bf16.mxu0 %v58_v22  ;;  %1552 = vmatprep.mubr.bf16.mxu1 %v58_v22  ;;  %v57_v18 = vpack.c.bf16 %v50_v16, %v43_v15  ;;  %v45_v22 = vld [vmem:[%s7267_s0 + $0x30] sm:$0xff]  ;;  %v1651_v15 = vld [vmem:[%s7268_s3 + $0x128] sm:$0xff]  ;;  %v1653_v16 = vld [vmem:[%s7268_s3 + $0x138] sm:$0xff] }
  0x87   :  { %1351 = vmatpush1.bf16.msra.mxu0 %v4907_v19  ;;  %1523 = vmatpush1.bf16.msra.mxu1 %v4910_v21  ;;  %v4997_v19 = vld [vmem:[%s7266_s1 + $0x600] ss:$16 sps:$4 sm:$0xff]   ;;  %v5341_v21 = vmov 0  }
  0x88   :  { %1352 = vmatprep.subr.bf16.mxu0 %v4915_v23  ;;  %1524 = vmatprep.subr.bf16.mxu1 %v4918_v24  ;;  %v52_v23 = vld [vmem:[%s7267_s0 + $0x68] sm:$0xff] }
  0x89   :  { %v1615_v24 = vld [vmem:[%s7268_s3 + $0x8] sm:$0xff] }
  0x8b   :  { %1353 = vmatpush1.bf16.msra.mxu0 %v4913_v25  ;;  %1525 = vmatpush1.bf16.msra.mxu1 %v4916_v26  ;;  %v1617_v25 = vld [vmem:[%s7268_s3 + $0x18] sm:$0xff]  ;;  %v59_v26 = vpack.c.bf16 %v52_v23, %v45_v22 }
  0x8c   :  { %1354 = vmatprep.subr.bf16.mxu0 %v4921_v27  ;;  %1526 = vmatprep.subr.bf16.mxu1 %v4924_v28  ;;  %v5000_v27 = vld [vmem:[%s7266_s1 + $0x608] ss:$16 sps:$4 sm:$0xff]   ;;  %v4507_v28 = vpack.c.bf16 %v1617_v25, %v1615_v24  ;;  %v1654_v25 = vld [vmem:[%s7268_s3 + $0x140] sm:$0xff] }
  0x8d   :  { %v1657_v22 = vld [vmem:[%s7268_s3 + $0x158] sm:$0xff] }
  0x8f   :  { %1355 = vmatpush1.bf16.msra.mxu0 %v4919_v29  ;;  %1527 = vmatpush1.bf16.msra.mxu1 %v4922_v30  ;;  %v1614_v29 = vld [vmem:[%s7268_s3] sm:$0xff]  ;;  %v1616_v30 = vld [vmem:[%s7268_s3 + $0x10] sm:$0xff] }
  0x90   :  { %1356 = vmatprep.subr.bf16.mxu0 %v4927_v31  ;;  %1528 = vmatprep.subr.bf16.mxu1 %v4930_v32  ;;  %v1619_v31 = vld [vmem:[%s7268_s3 + $0x28] sm:$0xff]  ;;  %v1621_v32 = vld [vmem:[%s7268_s3 + $0x38] sm:$0xff] }
  0x93   :  { %1357 = vmatpush1.bf16.msra.mxu0 %v4925_v33  ;;  %1529 = vmatpush1.bf16.msra.mxu1 %v4928_v34  ;;  %v4509_v33 = vpack.c.bf16 %v1616_v30, %v1614_v29  ;;  %v4511_v34 = vpack.c.bf16 %v1621_v32, %v1619_v31  ;;  %v1658_v31 = vld [vmem:[%s7268_s3 + $0x160] sm:$0xff]  ;;  %v1660_v32 = vld [vmem:[%s7268_s3 + $0x170] sm:$0xff] }
  0x94   :  { %1358 = vmatprep.subr.bf16.mxu0 %v4933_v35  ;;  %1530 = vmatprep.subr.bf16.mxu1 %v4936_v36  ;;  %v1618_v35 = vld [vmem:[%s7268_s3 + $0x20] sm:$0xff]  ;;  %v1620_v36 = vld [vmem:[%s7268_s3 + $0x30] sm:$0xff] }
  0x97   :  { %1359 = vmatpush1.bf16.msra.mxu0 %v4931_v37  ;;  %1531 = vmatpush1.bf16.msra.mxu1 %v4934_v38  ;;  %v1623_v37 = vld [vmem:[%s7268_s3 + $0x48] sm:$0xff]  ;;  %v1625_v38 = vld [vmem:[%s7268_s3 + $0x58] sm:$0xff] }
  0x98   :  { %1360 = vmatprep.subr.bf16.mxu0 %v4939_v39  ;;  %1532 = vmatprep.subr.bf16.mxu1 %v4942_v40  ;;  %v4513_v39 = vpack.c.bf16 %v1620_v36, %v1618_v35  ;;  %v4515_v40 = vpack.c.bf16 %v1625_v38, %v1623_v37  ;;  %v1665_v35 = vld [vmem:[%s7268_s3 + $0x198] sm:$0xff]  ;;  %v1662_v37 = vld [vmem:[%s7268_s3 + $0x180] sm:$0xff]  ;;  %v1664_v38 = vld [vmem:[%s7268_s3 + $0x190] sm:$0xff] }
  0x9b   :  { %1361 = vmatpush1.bf16.msra.mxu0 %v4937_v41  ;;  %1533 = vmatpush1.bf16.msra.mxu1 %v4940_v42  ;;  %v1622_v41 = vld [vmem:[%s7268_s3 + $0x40] sm:$0xff]  ;;  %v1624_v42 = vld [vmem:[%s7268_s3 + $0x50] sm:$0xff] }
  0x9c   :  { %1362 = vmatprep.subr.bf16.mxu0 %v4945_v43  ;;  %1534 = vmatprep.subr.bf16.mxu1 %v4948_v44  ;;  %v1627_v43 = vld [vmem:[%s7268_s3 + $0x68] sm:$0xff]  ;;  %v1629_v44 = vld [vmem:[%s7268_s3 + $0x78] sm:$0xff] }
  0x9f   :  { %1363 = vmatpush1.bf16.msra.mxu0 %v4943_v45  ;;  %1535 = vmatpush1.bf16.msra.mxu1 %v4946_v46  ;;  %v4517_v45 = vpack.c.bf16 %v1624_v42, %v1622_v41  ;;  %v4519_v46 = vpack.c.bf16 %v1629_v44, %v1627_v43  ;;  %v1669_v41 = vld [vmem:[%s7268_s3 + $0x1b8] sm:$0xff]  ;;  %v1666_v43 = vld [vmem:[%s7268_s3 + $0x1a0] sm:$0xff]  ;;  %v1668_v44 = vld [vmem:[%s7268_s3 + $0x1b0] sm:$0xff] }
  0xa0   :  { %1364 = vmatprep.subr.bf16.mxu0 %v4951_v47  ;;  %1536 = vmatprep.subr.bf16.mxu1 %v4954_v48  ;;  %v1626_v47 = vld [vmem:[%s7268_s3 + $0x60] sm:$0xff]  ;;  %v1628_v48 = vld [vmem:[%s7268_s3 + $0x70] sm:$0xff] }
  0xa3   :  { %1365 = vmatpush1.bf16.msra.mxu0 %v4949_v49  ;;  %1537 = vmatpush1.bf16.msra.mxu1 %v4952_v50  ;;  %v1631_v49 = vld [vmem:[%s7268_s3 + $0x88] sm:$0xff]  ;;  %v1633_v50 = vld [vmem:[%s7268_s3 + $0x98] sm:$0xff] }
  0xa4   :  { %1366 = vmatprep.subr.bf16.mxu0 %v4957_v51  ;;  %1538 = vmatprep.subr.bf16.mxu1 %v4960_v52  ;;  %v4521_v51 = vpack.c.bf16 %v1628_v48, %v1626_v47  ;;  %v4523_v52 = vpack.c.bf16 %v1633_v50, %v1631_v49  ;;  %v1673_v47 = vld [vmem:[%s7268_s3 + $0x1d8] sm:$0xff]  ;;  %v1670_v48 = vld [vmem:[%s7268_s3 + $0x1c0] sm:$0xff]  ;;  %v1672_v49 = vld [vmem:[%s7268_s3 + $0x1d0] sm:$0xff] }
  0xa7   :  { %1367 = vmatpush1.bf16.msra.mxu0 %v4955_v53  ;;  %1539 = vmatpush1.bf16.msra.mxu1 %v4958_v54  ;;  %v1630_v53 = vld [vmem:[%s7268_s3 + $0x80] sm:$0xff]  ;;  %v1632_v54 = vld [vmem:[%s7268_s3 + $0x90] sm:$0xff] }
  0xa8   :  { %1368 = vmatprep.subr.bf16.mxu0 %v4963_v55  ;;  %1540 = vmatprep.subr.bf16.mxu1 %v4966_v56  ;;  %v1635_v55 = vld [vmem:[%s7268_s3 + $0xa8] sm:$0xff]  ;;  %v1637_v56 = vld [vmem:[%s7268_s3 + $0xb8] sm:$0xff] }
  0xab   :  { %1369 = vmatpush1.bf16.msra.mxu0 %v4961_v57  ;;  %1541 = vmatpush1.bf16.msra.mxu1 %v4964_v58  ;;  %v4525_v57 = vpack.c.bf16 %v1632_v54, %v1630_v53  ;;  %v4527_v58 = vpack.c.bf16 %v1637_v56, %v1635_v55  ;;  %v1677_v53 = vld [vmem:[%s7268_s3 + $0x1f8] sm:$0xff]  ;;  %v1674_v55 = vld [vmem:[%s7268_s3 + $0x1e0] sm:$0xff]  ;;  %v1676_v56 = vld [vmem:[%s7268_s3 + $0x1f0] sm:$0xff] }
  0xac   :  { %1370 = vmatprep.subr.bf16.mxu0 %v4969_v59  ;;  %1542 = vmatprep.subr.bf16.mxu1 %v4972_v60  ;;  %v1634_v59 = vld [vmem:[%s7268_s3 + $0xa0] sm:$0xff]  ;;  %v1636_v60 = vld [vmem:[%s7268_s3 + $0xb0] sm:$0xff] }
  0xaf   :  { %1371 = vmatpush1.bf16.msra.mxu0 %v4967_v61  ;;  %1543 = vmatpush1.bf16.msra.mxu1 %v4970_v62  ;;  %v1639_v61 = vld [vmem:[%s7268_s3 + $0xc8] sm:$0xff]  ;;  %v1641_v62 = vld [vmem:[%s7268_s3 + $0xd8] sm:$0xff] }
  0xb0   :  { %1372 = vmatprep.subr.bf16.mxu0 %v4975_v63  ;;  %1544 = vmatprep.subr.bf16.mxu1 %v4978_v0  ;;  %v4529_v63 = vpack.c.bf16 %v1636_v60, %v1634_v59  ;;  %v4531_v0 = vpack.c.bf16 %v1641_v62, %v1639_v61  ;;  %v1681_v59 = vld [vmem:[%s7268_s3 + $0x218] sm:$0xff]  ;;  %v258_v61 = vlaneseq }
  0xb3   :  { %1373 = vmatpush1.bf16.msra.mxu0 %v4973_v1  ;;  %1545 = vmatpush1.bf16.msra.mxu1 %v4976_v2  ;;  %v1638_v1 = vld [vmem:[%s7268_s3 + $0xc0] sm:$0xff]  ;;  %v1640_v2 = vld [vmem:[%s7268_s3 + $0xd0] sm:$0xff] }
  0xb4   :  { %1374 = vmatprep.subr.bf16.mxu0 %v4981_v3  ;;  %1546 = vmatprep.subr.bf16.mxu1 %v4984_v4  ;;  %v1643_v3 = vld [vmem:[%s7268_s3 + $0xe8] sm:$0xff]  ;;  %v1645_v4 = vld [vmem:[%s7268_s3 + $0xf8] sm:$0xff] }
  0xb7   :  { %1375 = vmatpush1.bf16.msra.mxu0 %v4979_v5  ;;  %1547 = vmatpush1.bf16.msra.mxu1 %v4982_v6  ;;  %v4533_v5 = vpack.c.bf16 %v1640_v2, %v1638_v1  ;;  %v4535_v6 = vpack.c.bf16 %v1645_v4, %v1643_v3  ;;  %v6233_v1 = vshrl.u32 %v258_v61, 7  ;;  %v1694_v61 = vld [vmem:[%s7268_s3 + $0x280] sm:$0xff] }
  0xb8   :  { %1376 = vmatprep.subr.bf16.mxu0 %v4987_v7  ;;  %1548 = vmatprep.subr.bf16.mxu1 %v4990_v8  ;;  %v1642_v7 = vld [vmem:[%s7268_s3 + $0xe0] sm:$0xff]  ;;  %v1644_v8 = vld [vmem:[%s7268_s3 + $0xf0] sm:$0xff] }
  0xb9   :  { %v6236_v3 = vsub.s32 0, %v6233_v1  ;;  %v6239_v4 = vsub.s32 1, %v6233_v1 }
  0xbb   :  { %1377 = vmatpush1.bf16.msra.mxu0 %v4985_v9  ;;  %1549 = vmatpush1.bf16.msra.mxu1 %v4988_v10  ;;  %v1647_v9 = vld [vmem:[%s7268_s3 + $0x108] sm:$0xff]  ;;  %v1649_v10 = vld [vmem:[%s7268_s3 + $0x118] sm:$0xff] }
  0xbc   :  { %1378 = vmatprep.subr.bf16.mxu0 %v4993_v11  ;;  %1550 = vmatprep.subr.bf16.mxu1 %v4996_v12  ;;  %v4537_v11 = vpack.c.bf16 %v1644_v8, %v1642_v7  ;;  %v4539_v12 = vpack.c.bf16 %v1649_v10, %v1647_v9  ;;  %v6247_v8 = vsub.s32 2, %v6233_v1  ;;  %v6250_v9 = vsub.s32 3, %v6233_v1 }
  0xbf   :  { %1379 = vmatpush1.bf16.msra.mxu0 %v4991_v13  ;;  %1551 = vmatpush1.bf16.msra.mxu1 %v4994_v14  ;;  %v1646_v13 = vld [vmem:[%s7268_s3 + $0x100] sm:$0xff]  ;;  %v1648_v14 = vld [vmem:[%s7268_s3 + $0x110] sm:$0xff] }
  0xc0   :  { %1391 = vmatprep.subr.bf16.mxu0 %v4999_v17  ;;  %v4541_v17 = vpack.c.bf16 %v1648_v14, %v1646_v13  ;;  %v1678_v13 = vld [vmem:[%s7268_s3 + $0x200] sm:$0xff]  ;;  %v1680_v14 = vld [vmem:[%s7268_s3 + $0x210] sm:$0xff] }
  0xc2   :  { %1381 = vmatmul.mubr.bf16.vlgmr.msra.gmra.mrb[0].mxu0 %v57_v18  ;;  %1553 = vmatmul.mubr.bf16.vlgmr.msra.gmra.mrb[0].mxu1 %v57_v18  ;;  %v4543_v18 = vpack.c.bf16 %v1653_v16, %v1651_v15 }
  0xc3   :  { %1392 = vmatpush1.bf16.msra.mxu0 %v4997_v19  ;;  %1423 = vmatprep.mubr.bf16.mxu0 %v5341_v21  ;;  %v1650_v19 = vld [vmem:[%s7268_s3 + $0x120] sm:$0xff] }
  0xc4   :  { %1563 = vmatprep.subr.bf16.mxu0 %v5002_v20  ;;  %v1652_v20 = vld [vmem:[%s7268_s3 + $0x130] sm:$0xff] }
  0xc5   :  { %v4545_v23 = vpack.c.bf16 %v1652_v20, %v1650_v19 }
  0xce   :  { %4221 = vmatmul.mubr.msk.bf16.vlgmr.msra.gmra.mrb[0].mxu0 %vm1258_vm0, %v59_v26 }
  0xcf   :  { %1564 = vmatpush1.bf16.msra.mxu0 %v5000_v27  ;;  %1595 = vmatprep.mubr.bf16.mxu0 %v5341_v21  ;;  %v1655_v21 = vld [vmem:[%s7268_s3 + $0x148] sm:$0xff] }
  0xd0   :  { %4508 = vmatprep.subr.bf16.mxu0 %v4507_v28  ;;  %v4547_v24 = vpack.c.bf16 %v1657_v22, %v1655_v21  ;;  %v1659_v27 = vld [vmem:[%s7268_s3 + $0x168] sm:$0xff]  ;;  %v1661_v28 = vld [vmem:[%s7268_s3 + $0x178] sm:$0xff] }
  0xd1   :  { %v4551_v30 = vpack.c.bf16 %v1661_v28, %v1659_v27  ;;  %v1682_v28 = vld [vmem:[%s7268_s3 + $0x220] sm:$0xff] }
  0xd6   :  { %4222 = vmatmul.mubr.msk.bf16.vlgmr.msra.gmra.mrb[4].mxu0 %vm1258_vm0, %v59_v26  ;;  %v1656_v26 = vld [vmem:[%s7268_s3 + $0x150] sm:$0xff] }
  0xd7   :  { %4510 = vmatpush1.bf16.msra.mxu0 %v4509_v33  ;;  %v4549_v29 = vpack.c.bf16 %v1656_v26, %v1654_v25  ;;  %v4553_v33 = vpack.c.bf16 %v1660_v32, %v1658_v31  ;;  %v1687_v31 = vld [vmem:[%s7268_s3 + $0x248] sm:$0xff]  ;;  %v1689_v32 = vld [vmem:[%s7268_s3 + $0x258] sm:$0xff] }
  0xd8   :  { %4512 = vmatprep.subr.bf16.mxu0 %v4511_v34  ;;  %v1663_v34 = vld [vmem:[%s7268_s3 + $0x188] sm:$0xff] }
  0xd9   :  { %v4555_v36 = vpack.c.bf16 %v1665_v35, %v1663_v34 }
  0xdb   :  { %4514 = vmatpush1.bf16.msra.mxu0 %v4513_v39  ;;  %v4557_v39 = vpack.c.bf16 %v1664_v38, %v1662_v37 }
  0xdc   :  { %4516 = vmatprep.subr.bf16.mxu0 %v4515_v40  ;;  %v1667_v40 = vld [vmem:[%s7268_s3 + $0x1a8] sm:$0xff] }
  0xdd   :  { %v4559_v42 = vpack.c.bf16 %v1669_v41, %v1667_v40  ;;  %v4579_v41 = vpack.c.bf16 %v1689_v32, %v1687_v31  ;;  %v1714_v32 = vld [vmem:[%s7268_s3 + $0x320] sm:$0xff] }
  0xdf   :  { %4518 = vmatpush1.bf16.msra.mxu0 %v4517_v45  ;;  %v1671_v45 = vld [vmem:[%s7268_s3 + $0x1c8] sm:$0xff] }
  0xe0   :  { %4520 = vmatprep.subr.bf16.mxu0 %v4519_v46  ;;  %v4561_v46 = vpack.c.bf16 %v1668_v44, %v1666_v43  ;;  %v4563_v50 = vpack.c.bf16 %v1673_v47, %v1671_v45  ;;  %v1688_v43 = vld [vmem:[%s7268_s3 + $0x250] sm:$0xff]  ;;  %v1691_v47 = vld [vmem:[%s7268_s3 + $0x268] sm:$0xff] }
  0xe3   :  { %4522 = vmatpush1.bf16.msra.mxu0 %v4521_v51  ;;  %v4565_v51 = vpack.c.bf16 %v1672_v49, %v1670_v48  ;;  %v1693_v48 = vld [vmem:[%s7268_s3 + $0x278] sm:$0xff] }
  0xe4   :  { %4524 = vmatprep.subr.bf16.mxu0 %v4523_v52  ;;  %v1675_v52 = vld [vmem:[%s7268_s3 + $0x1e8] sm:$0xff] }
  0xe5   :  { %v4567_v54 = vpack.c.bf16 %v1677_v53, %v1675_v52 }
  0xe7   :  { %4526 = vmatpush1.bf16.msra.mxu0 %v4525_v57  ;;  %v4569_v57 = vpack.c.bf16 %v1676_v56, %v1674_v55  ;;  %v1690_v55 = vld [vmem:[%s7268_s3 + $0x260] sm:$0xff]  ;;  %v1692_v56 = vld [vmem:[%s7268_s3 + $0x270] sm:$0xff] }
  0xe8   :  { %4528 = vmatprep.subr.bf16.mxu0 %v4527_v58  ;;  %v1679_v58 = vld [vmem:[%s7268_s3 + $0x208] sm:$0xff] }
  0xe9   :  { %v4571_v60 = vpack.c.bf16 %v1681_v59, %v1679_v58  ;;  %v1697_v58 = vld [vmem:[%s7268_s3 + $0x298] sm:$0xff]  ;;  %v4585_v59 = vpack.c.bf16 %v1692_v56, %v1690_v55  ;;  %v1731_v55 = vld [vmem:[%s7268_s3 + $0x3a8] sm:$0xff] }
  0xea   :  { %v1733_v56 = vld [vmem:[%s7268_s3 + $0x3b8] sm:$0xff] }
  0xeb   :  { %4530 = vmatpush1.bf16.msra.mxu0 %v4529_v63 }
  0xec   :  { %4532 = vmatprep.subr.bf16.mxu0 %v4531_v0 }
  0xef   :  { %4534 = vmatpush1.bf16.msra.mxu0 %v4533_v5  ;;  %v256_v5 = vld [vmem:[%s7269_s2] sm:$0xf] }
  0xf0   :  { %4536 = vmatprep.subr.bf16.mxu0 %v4535_v6  ;;  %v261_v6 = vrot.slane %v256_v5, %v6236_v3  ;;  %v265_v7 = vrot.slane %v256_v5, %v6239_v4  ;;  %v269_v19 = vrot.slane %v256_v5, %v6247_v8  ;;  %v273_v21 = vrot.slane %v256_v5, %v6250_v9 }
  0xf3   :  { %4538 = vmatpush1.bf16.msra.mxu0 %v4537_v11 }
  0xf4   :  { %4540 = vmatprep.subr.bf16.mxu0 %v4539_v12 }
  0xf7   :  { %4542 = vmatpush1.bf16.msra.mxu0 %v4541_v17  ;;  %v1683_v17 = vld [vmem:[%s7268_s3 + $0x228] sm:$0xff] }
  0xf8   :  { %4544 = vmatprep.subr.bf16.mxu0 %v4543_v18  ;;  %v1685_v18 = vld [vmem:[%s7268_s3 + $0x238] sm:$0xff] }
  0xf9   :  { %v4575_v27 = vpack.c.bf16 %v1685_v18, %v1683_v17  ;;  %v1709_v17 = vld [vmem:[%s7268_s3 + $0x2f8] sm:$0xff] }
  0xfb   :  { %4546 = vmatpush1.bf16.msra.mxu0 %v4545_v23 }
  0xfc   :  { %4548 = vmatprep.subr.bf16.mxu0 %v4547_v24  ;;  %v4573_v24 = vpack.c.bf16 %v1680_v14, %v1678_v13  ;;  %v1702_v14 = vld [vmem:[%s7268_s3 + $0x2c0] sm:$0xff] }
  0xff   :  { %4550 = vmatpush1.bf16.msra.mxu0 %v4549_v29  ;;  %v1684_v29 = vld [vmem:[%s7268_s3 + $0x230] sm:$0xff] }
 0x100   :  { %4552 = vmatprep.subr.bf16.mxu0 %v4551_v30 }
 0x103   :  { %4554 = vmatpush1.bf16.msra.mxu0 %v4553_v33 }
 0x104   :  { %4556 = vmatprep.subr.bf16.mxu0 %v4555_v36  ;;  %v4577_v36 = vpack.c.bf16 %v1684_v29, %v1682_v28  ;;  %v1715_v28 = vld [vmem:[%s7268_s3 + $0x328] sm:$0xff]  ;;  %v1717_v29 = vld [vmem:[%s7268_s3 + $0x338] sm:$0xff] }
 0x105   :  { %v4607_v31 = vpack.c.bf16 %v1717_v29, %v1715_v28  ;;  %v5008_v28 = vld [vmem:[%s7271_s7 + $0xc] ss:$28 sps:$4 sm:$0xff]   ;;  %v5012_v29 = vld [vmem:[%s7271_s7 + $0x40] ss:$28 sps:$4 sm:$0xff]  }
 0x107   :  { %4558 = vmatpush1.bf16.msra.mxu0 %v4557_v39 }
 0x108   :  { %4560 = vmatprep.subr.bf16.mxu0 %v4559_v42  ;;  %v1686_v42 = vld [vmem:[%s7268_s3 + $0x240] sm:$0xff] }
 0x109   :  { %v4581_v53 = vpack.c.bf16 %v1688_v43, %v1686_v42  ;;  %v1725_v42 = vld [vmem:[%s7268_s3 + $0x378] sm:$0xff] }
 0x10b   :  { %4562 = vmatpush1.bf16.msra.mxu0 %v4561_v46 }
 0x10c   :  { %4564 = vmatprep.subr.bf16.mxu0 %v4563_v50 }
 0x10f   :  { %4566 = vmatpush1.bf16.msra.mxu0 %v4565_v51 }
 0x110   :  { %4568 = vmatprep.subr.bf16.mxu0 %v4567_v54  ;;  %v4583_v54 = vpack.c.bf16 %v1693_v48, %v1691_v47  ;;  %v1727_v47 = vld [vmem:[%s7268_s3 + $0x388] sm:$0xff]  ;;  %v1729_v48 = vld [vmem:[%s7268_s3 + $0x398] sm:$0xff] }
 0x113   :  { %4570 = vmatpush1.bf16.msra.mxu0 %v4569_v57  ;;  %v1695_v57 = vld [vmem:[%s7268_s3 + $0x288] sm:$0xff] }
 0x114   :  { %4572 = vmatprep.subr.bf16.mxu0 %v4571_v60  ;;  %v4587_v60 = vpack.c.bf16 %v1697_v58, %v1695_v57  ;;  %v4623_v58 = vpack.c.bf16 %v1733_v56, %v1731_v55  ;;  %v5078_v55 = vld [vmem:[%s7271_s7 + $0x2a8] ss:$28 sps:$4 sm:$0xff]   ;;  %v1742_v56 = vld [vmem:[%s7272_s4] sm:$0x3] }
 0x195   :  { %v1554_v62 = vpop.f32.mrb[0].mxu1 }
 0x196   :  { %v1556_v63 = vpop.f32.mrb[1].mxu1  ;;  %v4647_v33 = vadd.f32 %v1554_v62, %v269_v19  ;;  %v1696_v62 = vld [vmem:[%s7268_s3 + $0x290] sm:$0xff] }
 0x197   :  { %v1558_v0 = vpop.f32.mrb[2].mxu1  ;;  %v4649_v34 = vadd.f32 %v1556_v63, %v273_v21  ;;  %v1699_v63 = vld [vmem:[%s7268_s3 + $0x2a8] sm:$0xff] }
 0x198   :  { %v1560_v2 = vpop.f32.mrb[3].mxu1  ;;  %v4651_v37 = vadd.f32 %v1558_v0, %v269_v19  ;;  %v1701_v0 = vld [vmem:[%s7268_s3 + $0x2b8] sm:$0xff] }
 0x199   :  { %v4653_v44 = vadd.f32 %v1560_v2, %v273_v21  ;;  %v4589_v2 = vpack.c.bf16 %v1696_v62, %v1694_v61  ;;  %v4591_v5 = vpack.c.bf16 %v1701_v0, %v1699_v63  ;;  %v1708_v21 = vld [vmem:[%s7268_s3 + $0x2f0] sm:$0xff]  ;;  %v1735_v61 = vld [vmem:[%s7268_s3 + $0x3c8] sm:$0xff]  ;;  %v1737_v62 = vld [vmem:[%s7268_s3 + $0x3d8] sm:$0xff] }
 0x19a   :  { %v4627_v0 = vpack.c.bf16 %v1737_v62, %v1735_v61 }
 0x1a1   :  { %v1425_v10 = vpop.f32.mrb[0].mxu0 }
 0x1a2   :  { %v4643_v11 = vadd.f32 %v1425_v10, %v261_v6  ;;  %v1427_v12 = vpop.f32.mrb[1].mxu0  ;;  %v1703_v10 = vld [vmem:[%s7268_s3 + $0x2c8] sm:$0xff] }
 0x1a3   :  { %v4644_v15 = vadd.f32 %v1427_v12, %v265_v7  ;;  %v1429_v16 = vpop.f32.mrb[2].mxu0 }
 0x1a4   :  { %v1431_v20 = vpop.f32.mrb[3].mxu0  ;;  %v1606_v25 = vmax.f32 %v4643_v11, 0.0  ;;  %v4645_v26 = vadd.f32 %v1429_v16, %v261_v6  ;;  %v1698_v6 = vld [vmem:[%s7268_s3 + $0x2a0] sm:$0xff]  ;;  %v1705_v11 = vld [vmem:[%s7268_s3 + $0x2d8] sm:$0xff]  ;;  %v1707_v16 = vld [vmem:[%s7268_s3 + $0x2e8] sm:$0xff] }
 0x1a5   :  { %v1607_v22 = vmax.f32 %v4644_v15, 0.0  ;;  %v4646_v23 = vadd.f32 %v1431_v20, %v265_v7  ;;  %v1700_v7 = vld [vmem:[%s7268_s3 + $0x2b0] sm:$0xff]  ;;  %v4595_v13 = vpack.c.bf16 %v1705_v11, %v1703_v10  ;;  %v4599_v19 = vpack.c.bf16 %v1709_v17, %v1707_v16  ;;  %v1706_v20 = vld [vmem:[%s7268_s3 + $0x2e0] sm:$0xff] }
 0x1a6   :  { %v1610_v38 = vmax.f32 %v4645_v26, 0.0  ;;  %v4593_v12 = vpack.c.bf16 %v1700_v7, %v1698_v6  ;;  %v1704_v15 = vld [vmem:[%s7268_s3 + $0x2d0] sm:$0xff]  ;;  %v1710_v26 = vld [vmem:[%s7268_s3 + $0x300] sm:$0xff]  ;;  %v1739_v6 = vld [vmem:[%s7268_s3 + $0x3e8] sm:$0xff] }
 0x1a7   :  { %v1611_v30 = vmax.f32 %v4646_v23, 0.0  ;;  %1818 = vmatprep.mubr.f32.mxu0 %v1607_v22  ;;  %v4597_v18 = vpack.c.bf16 %v1704_v15, %v1702_v14  ;;  %v1711_v22 = vld [vmem:[%s7268_s3 + $0x308] sm:$0xff]  ;;  %v1713_v23 = vld [vmem:[%s7268_s3 + $0x318] sm:$0xff] }
 0x1a8   :  { %1819 = vmatmul.mubr.f32.vlgmr.msra.gmra.mrb[8].mxu0 %v1606_v25  ;;  %v4603_v25 = vpack.c.bf16 %v1713_v23, %v1711_v22  ;;  %v1741_v7 = vld [vmem:[%s7268_s3 + $0x3f8] sm:$0xff]  ;;  %v1929_v22 = vld [vmem:[%s7270_s5 + $0x48] sm:$0xf]  ;;  %v1928_v23 = vld [vmem:[%s7270_s5 + $0x40] sm:$0xf] }
 0x1a9   :  { %4574 = vmatpush1.bf16.msra.mxu0 %v4573_v24  ;;  %v1597_v35 = vpop.f32.mrb[4].mxu0  ;;  %1824 = vmatprep.mubr.f32.mxu0 %v1611_v30  ;;  %v4601_v24 = vpack.c.bf16 %v1708_v21, %v1706_v20  ;;  %v4631_v11 = vpack.c.bf16 %v1741_v7, %v1739_v6  ;;  %v1920_v20 = vld [vmem:[%s7270_s5] sm:$0xff] }
 0x1aa   :  { %v6278_v39 = vadd.f32 %v4647_v33, %v1597_v35  ;;  %v1599_v40 = vpop.f32.mrb[5].mxu0  ;;  %4576 = vmatprep.subr.bf16.mxu0 %v4575_v27  ;;  %v1712_v27 = vld [vmem:[%s7268_s3 + $0x310] sm:$0xff]  ;;  %v1721_v35 = vld [vmem:[%s7268_s3 + $0x358] sm:$0xff] }
 0x1ab   :  { %v4650_v45 = vadd.f32 %v4649_v34, %v1599_v40  ;;  %v1601_v46 = vpop.f32.mrb[6].mxu0  ;;  %v4605_v30 = vpack.c.bf16 %v1712_v27, %v1710_v26  ;;  %v1716_v33 = vld [vmem:[%s7268_s3 + $0x330] sm:$0xff]  ;;  %v1719_v34 = vld [vmem:[%s7268_s3 + $0x348] sm:$0xff] }
 0x1ac   :  { %v6292_v49 = vadd.f32 %v4651_v37, %v1601_v46  ;;  %v1603_v50 = vpop.f32.mrb[7].mxu0  ;;  %1825 = vmatmul.mubr.f32.gmra.mrb[10].mxu0 %v1610_v38  ;;  %v4611_v37 = vpack.c.bf16 %v1721_v35, %v1719_v34  ;;  %v1718_v38 = vld [vmem:[%s7268_s3 + $0x340] sm:$0xff]  ;;  %v1720_v40 = vld [vmem:[%s7268_s3 + $0x350] sm:$0xff]  ;;  %v1608_v15 = vmax.f32 %v6278_v39, 0.0  ;;  %v5342_v39 = vmov 0.0  }
 0x1ad   :  { %v1609_v51 = vmax.f32 %v4650_v45, 0.0  ;;  %v6294_v52 = vadd.f32 %v4653_v44, %v1603_v50  ;;  %4578 = vmatpush1.bf16.msra.mxu0 %v4577_v36  ;;  %v4609_v36 = vpack.c.bf16 %v1716_v33, %v1714_v32  ;;  %v4613_v43 = vpack.c.bf16 %v1720_v40, %v1718_v38  ;;  %v1722_v45 = vld [vmem:[%s7268_s3 + $0x360] sm:$0xff]  ;;  %v1724_v46 = vld [vmem:[%s7268_s3 + $0x370] sm:$0xff]  ;;  %2038 = vmatprep.mubr.f32.mxu1 %v5342_v39  ;;  %v5032_v35 = vld [vmem:[%s7271_s7 + $0xec] ss:$28 sps:$4 sm:$0xff]  }
 0x1ae   :  { %4580 = vmatprep.subr.bf16.mxu0 %v4579_v41  ;;  %v1723_v41 = vld [vmem:[%s7268_s3 + $0x368] sm:$0xff]  ;;  %v4617_v50 = vpack.c.bf16 %v1724_v46, %v1722_v45  ;;  %v1612_v17 = vmax.f32 %v6292_v49, 0.0  ;;  %v1924_v49 = vld [vmem:[%s7270_s5 + $0x20] sm:$0xff]  ;;  %v5018_v32 = vld [vmem:[%s7271_s7 + $0x78] ss:$28 sps:$4 sm:$0xff]  }
 0x1af   :  { %1895 = vmatprep.mubr.f32.mxu0 %v1609_v51  ;;  %v4615_v44 = vpack.c.bf16 %v1725_v42, %v1723_v41  ;;  %v4619_v51 = vpack.c.bf16 %v1729_v48, %v1727_v47  ;;  %v1613_v16 = vmax.f32 %v6294_v52, 0.0  ;;  %v4637_v21 = vpack.c.bf16 %v1924_v49, %v1920_v20  ;;  %v5006_v27 = vld [vmem:[%s7271_s7 + $0x8] ss:$28 sps:$4 sm:$0xff]   ;;  %v5026_v33 = vld [vmem:[%s7271_s7 + $0xb4] ss:$28 sps:$4 sm:$0xff]  }
 0x1b0   :  { %v5024_v34 = vld [vmem:[%s7271_s7 + $0xb0] ss:$28 sps:$4 sm:$0xff]   ;;  %v5036_v38 = vld [vmem:[%s7271_s7 + $0x120] ss:$28 sps:$4 sm:$0xff]   ;;  %v5042_v41 = vld [vmem:[%s7271_s7 + $0x158] ss:$28 sps:$4 sm:$0xff]  }
 0x1b1   :  { %4582 = vmatpush1.bf16.msra.mxu0 %v4581_v53  ;;  %v1726_v53 = vld [vmem:[%s7268_s3 + $0x380] sm:$0xff]  ;;  %v5044_v40 = vld [vmem:[%s7271_s7 + $0x15c] ss:$28 sps:$4 sm:$0xff]   ;;  %v5050_v42 = vld [vmem:[%s7271_s7 + $0x194] ss:$28 sps:$4 sm:$0xff]  }
 0x1b2   :  { %4584 = vmatprep.subr.bf16.mxu0 %v4583_v54  ;;  %v1728_v54 = vld [vmem:[%s7268_s3 + $0x390] sm:$0xff]  ;;  %v5054_v45 = vld [vmem:[%s7271_s7 + $0x1c8] ss:$28 sps:$4 sm:$0xff]   ;;  %v5060_v47 = vld [vmem:[%s7271_s7 + $0x200] ss:$28 sps:$4 sm:$0xff]  }
 0x1b3   :  { %v4621_v57 = vpack.c.bf16 %v1728_v54, %v1726_v53  ;;  %v5062_v46 = vld [vmem:[%s7271_s7 + $0x204] ss:$28 sps:$4 sm:$0xff]   ;;  %v5068_v48 = vld [vmem:[%s7271_s7 + $0x23c] ss:$28 sps:$4 sm:$0xff]   ;;  %v5072_v53 = vld [vmem:[%s7271_s7 + $0x270] ss:$28 sps:$4 sm:$0xff]  }
 0x1b4   :  { %v5080_v54 = vld [vmem:[%s7271_s7 + $0x2ac] ss:$28 sps:$4 sm:$0xff]  }
 0x1b5   :  { %4586 = vmatpush1.bf16.msra.mxu0 %v4585_v59  ;;  %v1730_v59 = vld [vmem:[%s7268_s3 + $0x3a0] sm:$0xff] }
 0x1b6   :  { %4588 = vmatprep.subr.bf16.mxu0 %v4587_v60  ;;  %v1732_v60 = vld [vmem:[%s7268_s3 + $0x3b0] sm:$0xff] }
 0x1b7   :  { %v4625_v63 = vpack.c.bf16 %v1732_v60, %v1730_v59 }
 0x1b9   :  { %4590 = vmatpush1.bf16.msra.mxu0 %v4589_v2  ;;  %v1734_v2 = vld [vmem:[%s7268_s3 + $0x3c0] sm:$0xff] }
 0x1ba   :  { %4592 = vmatprep.subr.bf16.mxu0 %v4591_v5  ;;  %v1736_v5 = vld [vmem:[%s7268_s3 + $0x3d0] sm:$0xff] }
 0x1bb   :  { %v4629_v10 = vpack.c.bf16 %v1736_v5, %v1734_v2 }
 0x1bd   :  { %4594 = vmatpush1.bf16.msra.mxu0 %v4593_v12  ;;  %v1738_v12 = vld [vmem:[%s7268_s3 + $0x3e0] sm:$0xff] }
 0x1be   :  { %4596 = vmatprep.subr.bf16.mxu0 %v4595_v13  ;;  %v1740_v13 = vld [vmem:[%s7268_s3 + $0x3f0] sm:$0xff] }
 0x1bf   :  { %v4633_v14 = vpack.c.bf16 %v1740_v13, %v1738_v12  ;;  %v1908_v12 = vld [vmem:[%s7274_s9] sm:$0xff]  ;;  %v1922_v13 = vld [vmem:[%s7270_s5 + $0x10] sm:$0xff] }
 0x1c1   :  { %4598 = vmatpush1.bf16.msra.mxu0 %v4597_v18  ;;  %v1921_v18 = vld [vmem:[%s7270_s5 + $0x8] sm:$0xff] }
 0x1c2   :  { %4600 = vmatprep.subr.bf16.mxu0 %v4599_v19  ;;  %v1925_v19 = vld [vmem:[%s7270_s5 + $0x28] sm:$0xff] }
 0x1c3   :  { %v4635_v52 = vpack.c.bf16 %v1925_v19, %v1921_v18  ;;  %v1909_v18 = vld [vmem:[%s7274_s9 + $0x8] sm:$0xff] }
 0x1c5   :  { %4602 = vmatpush1.bf16.msra.mxu0 %v4601_v24  ;;  %4636 = vmatprep.subr.bf16.mxu1 %v4635_v52  ;;  %v1923_v24 = vld [vmem:[%s7270_s5 + $0x18] sm:$0xff] }
 0x1c6   :  { %4604 = vmatprep.subr.bf16.mxu0 %v4603_v25  ;;  %4638 = vmatpush1.bf16.msra.mxu1 %v4637_v21  ;;  %v1927_v25 = vld [vmem:[%s7270_s5 + $0x38] sm:$0xff] }
 0x1c7   :  { %4223 = vmatprep.subr.msk.mxu1 %vm1961_vm1, %v1929_v22  ;;  %v4639_v26 = vpack.c.bf16 %v1927_v25, %v1923_v24  ;;  %v1931_v52 = vld [vmem:[%s7270_s5 + $0x58] sm:$0xf]  ;;  %v1930_v22 = vld [vmem:[%s7270_s5 + $0x50] sm:$0xf]  ;;  %v5003_v24 = vld [vmem:[%s7271_s7] ss:$28 sps:$4 sm:$0xff]  }
 0x1c8   :  { %v5011_v25 = vld [vmem:[%s7271_s7 + $0x3c] ss:$28 sps:$4 sm:$0xff]  }
 0x1c9   :  { %4606 = vmatpush1.bf16.msra.mxu0 %v4605_v30  ;;  %v5014_v30 = vld [vmem:[%s7271_s7 + $0x44] ss:$28 sps:$4 sm:$0xff]  }
 0x1ca   :  { %4608 = vmatprep.subr.bf16.mxu0 %v4607_v31  ;;  %4224 = vmatpush1.msk.msra.mxu1 %vm1961_vm1, %v1928_v23  ;;  %v5020_v31 = vld [vmem:[%s7271_s7 + $0x7c] ss:$28 sps:$4 sm:$0xff]   ;;  %v5005_v23 = vld [vmem:[%s7271_s7 + $0x4] ss:$28 sps:$4 sm:$0xff]  }
 0x1cb   :  { %4640 = vmatprep.subr.bf16.mxu1 %v4639_v26  ;;  %v5009_v26 = vld [vmem:[%s7271_s7 + $0x38] ss:$28 sps:$4 sm:$0xff]  }
 0x1cd   :  { %4610 = vmatpush1.bf16.msra.mxu0 %v4609_v36  ;;  %v5030_v36 = vld [vmem:[%s7271_s7 + $0xe8] ss:$28 sps:$4 sm:$0xff]  }
 0x1ce   :  { %4612 = vmatprep.subr.bf16.mxu0 %v4611_v37  ;;  %v5038_v37 = vld [vmem:[%s7271_s7 + $0x124] ss:$28 sps:$4 sm:$0xff]  }
 0x1d1   :  { %4614 = vmatpush1.bf16.msra.mxu0 %v4613_v43  ;;  %v5048_v43 = vld [vmem:[%s7271_s7 + $0x190] ss:$28 sps:$4 sm:$0xff]  }
 0x1d2   :  { %4616 = vmatprep.subr.bf16.mxu0 %v4615_v44  ;;  %v5056_v44 = vld [vmem:[%s7271_s7 + $0x1cc] ss:$28 sps:$4 sm:$0xff]  }
 0x1d5   :  { %4618 = vmatpush1.bf16.msra.mxu0 %v4617_v50  ;;  %v5066_v50 = vld [vmem:[%s7271_s7 + $0x238] ss:$28 sps:$4 sm:$0xff]  }
 0x1d6   :  { %4620 = vmatprep.subr.bf16.mxu0 %v4619_v51  ;;  %v5074_v51 = vld [vmem:[%s7271_s7 + $0x274] ss:$28 sps:$4 sm:$0xff]  }
 0x1d9   :  { %4622 = vmatpush1.bf16.msra.mxu0 %v4621_v57  ;;  %v1747_v57 = vrot.slane %v1742_v56, %v6236_v3 }
 0x1da   :  { %4624 = vmatprep.subr.bf16.mxu0 %v4623_v58  ;;  %v1751_v58 = vrot.slane %v1742_v56, %v6239_v4  ;;  %v5092_v56 = vld [vmem:[%s7271_s7 + $0x31c] ss:$28 sps:$4 sm:$0xff]  }
 0x1dd   :  { %4626 = vmatpush1.bf16.msra.mxu0 %v4625_v63 }
 0x1de   :  { %4628 = vmatprep.subr.bf16.mxu0 %v4627_v0 }
 0x1e1   :  { %4630 = vmatpush1.bf16.msra.mxu0 %v4629_v10 }
 0x1e2   :  { %4632 = vmatprep.subr.bf16.mxu0 %v4631_v11 }
 0x1e5   :  { %4634 = vmatpush1.bf16.msra.mxu0 %v4633_v14  ;;  %v1926_v14 = vld [vmem:[%s7270_s5 + $0x30] sm:$0xff] }
 0x1e6   :  { %3671 = vmatprep.subr.bf16.mxu0 %v5008_v28  ;;  %v5015_v28 = vld [vmem:[%s7271_s7 + $0x70] ss:$28 sps:$4 sm:$0xff]  }
 0x1e8   :  { %1896 = vmatmul.mubr.f32.vlgmr.msra.gmra.mrb[8].mxu0 %v1608_v15 }
 0x1e9   :  { %1901 = vmatprep.mubr.f32.mxu0 %v1613_v16  ;;  %3672 = vmatpush1.bf16.msra.mxu0 %v5006_v27  ;;  %v5017_v27 = vld [vmem:[%s7271_s7 + $0x74] ss:$28 sps:$4 sm:$0xff]  }
 0x1ea   :  { %3673 = vmatprep.subr.bf16.mxu0 %v5014_v30  ;;  %v5029_v30 = vld [vmem:[%s7271_s7 + $0xe4] ss:$28 sps:$4 sm:$0xff]  }
 0x1ec   :  { %1902 = vmatmul.mubr.f32.gmra.mrb[10].mxu0 %v1612_v17  ;;  %v4641_v17 = vpack.c.bf16 %v1926_v14, %v1922_v13 }
 0x1ed   :  { %3674 = vmatpush1.bf16.msra.mxu0 %v5012_v29  ;;  %v5021_v29 = vld [vmem:[%s7271_s7 + $0xa8] ss:$28 sps:$4 sm:$0xff]  }
 0x1ee   :  { %3675 = vmatprep.subr.bf16.mxu0 %v5020_v31  ;;  %v5027_v31 = vld [vmem:[%s7271_s7 + $0xe0] ss:$28 sps:$4 sm:$0xff]  }
 0x1f1   :  { %3676 = vmatpush1.bf16.msra.mxu0 %v5018_v32  ;;  %v5035_v32 = vld [vmem:[%s7271_s7 + $0x11c] ss:$28 sps:$4 sm:$0xff]  }
 0x1f2   :  { %3677 = vmatprep.subr.bf16.mxu0 %v5026_v33  ;;  %v5033_v33 = vld [vmem:[%s7271_s7 + $0x118] ss:$28 sps:$4 sm:$0xff]  }
 0x1f5   :  { %3678 = vmatpush1.bf16.msra.mxu0 %v5024_v34  ;;  %v5041_v34 = vld [vmem:[%s7271_s7 + $0x154] ss:$28 sps:$4 sm:$0xff]  }
 0x1f6   :  { %3679 = vmatprep.subr.bf16.mxu0 %v5032_v35  ;;  %v5039_v35 = vld [vmem:[%s7271_s7 + $0x150] ss:$28 sps:$4 sm:$0xff]  }
 0x1f9   :  { %3680 = vmatpush1.bf16.msra.mxu0 %v5030_v36  ;;  %v5047_v36 = vld [vmem:[%s7271_s7 + $0x18c] ss:$28 sps:$4 sm:$0xff]  }
 0x1fa   :  { %3681 = vmatprep.subr.bf16.mxu0 %v5038_v37  ;;  %v5045_v37 = vld [vmem:[%s7271_s7 + $0x188] ss:$28 sps:$4 sm:$0xff]  }
 0x1fd   :  { %3682 = vmatpush1.bf16.msra.mxu0 %v5036_v38  ;;  %v5053_v38 = vld [vmem:[%s7271_s7 + $0x1c4] ss:$28 sps:$4 sm:$0xff]  }
 0x1fe   :  { %3683 = vmatprep.subr.bf16.mxu0 %v5044_v40  ;;  %v5051_v40 = vld [vmem:[%s7271_s7 + $0x1c0] ss:$28 sps:$4 sm:$0xff]  }
 0x201   :  { %3684 = vmatpush1.bf16.msra.mxu0 %v5042_v41  ;;  %v5059_v41 = vld [vmem:[%s7271_s7 + $0x1fc] ss:$28 sps:$4 sm:$0xff]  }
 0x202   :  { %3685 = vmatprep.subr.bf16.mxu0 %v5050_v42  ;;  %v5057_v42 = vld [vmem:[%s7271_s7 + $0x1f8] ss:$28 sps:$4 sm:$0xff]  }
 0x205   :  { %3686 = vmatpush1.bf16.msra.mxu0 %v5048_v43  ;;  %v5065_v43 = vld [vmem:[%s7271_s7 + $0x234] ss:$28 sps:$4 sm:$0xff]  }
 0x206   :  { %3687 = vmatprep.subr.bf16.mxu0 %v5056_v44  ;;  %v5063_v44 = vld [vmem:[%s7271_s7 + $0x230] ss:$28 sps:$4 sm:$0xff]  }
 0x209   :  { %3688 = vmatpush1.bf16.msra.mxu0 %v5054_v45  ;;  %v5071_v45 = vld [vmem:[%s7271_s7 + $0x26c] ss:$28 sps:$4 sm:$0xff]  }
 0x20a   :  { %3689 = vmatprep.subr.bf16.mxu0 %v5062_v46  ;;  %v5069_v46 = vld [vmem:[%s7271_s7 + $0x268] ss:$28 sps:$4 sm:$0xff]  }
 0x20d   :  { %3690 = vmatpush1.bf16.msra.mxu0 %v5060_v47  ;;  %v5077_v47 = vld [vmem:[%s7271_s7 + $0x2a4] ss:$28 sps:$4 sm:$0xff]  }
 0x20e   :  { %3691 = vmatprep.subr.bf16.mxu0 %v5068_v48  ;;  %v5075_v48 = vld [vmem:[%s7271_s7 + $0x2a0] ss:$28 sps:$4 sm:$0xff]  }
 0x211   :  { %3692 = vmatpush1.bf16.msra.mxu0 %v5066_v50  ;;  %v5083_v50 = vld [vmem:[%s7271_s7 + $0x2dc] ss:$28 sps:$4 sm:$0xff]  }
 0x212   :  { %3693 = vmatprep.subr.bf16.mxu0 %v5074_v51  ;;  %v5086_v51 = vld [vmem:[%s7271_s7 + $0x2e4] ss:$28 sps:$4 sm:$0xff]  }
 0x215   :  { %3694 = vmatpush1.bf16.msra.mxu0 %v5072_v53  ;;  %v5081_v53 = vld [vmem:[%s7271_s7 + $0x2d8] ss:$28 sps:$4 sm:$0xff]  }
 0x216   :  { %3695 = vmatprep.subr.bf16.mxu0 %v5080_v54  ;;  %v5084_v54 = vld [vmem:[%s7271_s7 + $0x2e0] ss:$28 sps:$4 sm:$0xff]  }
 0x219   :  { %3696 = vmatpush1.bf16.msra.mxu0 %v5078_v55  ;;  %v5089_v55 = vld [vmem:[%s7271_s7 + $0x314] ss:$28 sps:$4 sm:$0xff]  }
 0x21a   :  { %3697 = vmatprep.subr.bf16.mxu0 %v5086_v51  ;;  %v5120_v51 = vld [vmem:[%s7271_s7 + $0x430] ss:$28 sps:$4 sm:$0xff]  }
 0x21d   :  { %3698 = vmatpush1.bf16.msra.mxu0 %v5084_v54  ;;  %v5128_v54 = vld [vmem:[%s7271_s7 + $0x46c] ss:$28 sps:$4 sm:$0xff]  }
 0x21e   :  { %3699 = vmatprep.subr.bf16.mxu0 %v5092_v56  ;;  %v5126_v56 = vld [vmem:[%s7271_s7 + $0x468] ss:$28 sps:$4 sm:$0xff]  }
 0x2bb   :  { %v1897_v59 = vpop.f32.mrb[8].mxu0 }
 0x2bc   :  { %v4655_v60 = vadd.f32 %v1897_v59, %v1747_v57  ;;  %v1899_v61 = vpop.f32.mrb[9].mxu0  ;;  %v5095_v59 = vld [vmem:[%s7271_s7 + $0x34c] ss:$28 sps:$4 sm:$0xff]  }
 0x2bd   :  { %v4656_v62 = vadd.f32 %v1899_v61, %v1751_v58  ;;  %v5093_v61 = vld [vmem:[%s7271_s7 + $0x348] ss:$28 sps:$4 sm:$0xff]  }
 0x2be   :  { %4013 = vst [vmem:[%s7273_s11] sm:$0xff] %v4655_v60 }
 0x2bf   :  { %v1910_v63 = vmul.f32 0.5, %v4656_v62  ;;  %4014 = vst [vmem:[%s7273_s11 + $0x8] sm:$0xff] %v4656_v62  ;;  %v1903_v0 = vpop.f32.mrb[10].mxu0  ;;  %v5096_v62 = vld [vmem:[%s7271_s7 + $0x350] ss:$28 sps:$4 sm:$0xff]  }
 0x2c0   :  { %v4657_v2 = vadd.f32 %v1903_v0, %v1747_v57  ;;  %v1905_v5 = vpop.f32.mrb[11].mxu0  ;;  %v5087_v57 = vld [vmem:[%s7271_s7 + $0x310] ss:$28 sps:$4 sm:$0xff]  }
 0x2c1   :  { %v1912_v6 = vmul.f32 1.442695, %v1910_v63  ;;  %v4658_v7 = vadd.f32 %v1905_v5, %v1751_v58  ;;  %v5090_v58 = vld [vmem:[%s7271_s7 + $0x318] ss:$28 sps:$4 sm:$0xff]   ;;  %v5101_v63 = vld [vmem:[%s7271_s7 + $0x384] ss:$28 sps:$4 sm:$0xff]  }
 0x2c2   :  { %4015 = vst [vmem:[%s7273_s11 + $0x10] sm:$0xff] %v4657_v2  ;;  %3700 = vmatpush1.bf16.msra.mxu0 %v5090_v58  ;;  %v5104_v0 = vld [vmem:[%s7271_s7 + $0x38c] ss:$28 sps:$4 sm:$0xff]   ;;  %v5134_v58 = vld [vmem:[%s7271_s7 + $0x4a4] ss:$28 sps:$4 sm:$0xff]  }
 0x2c3   :  { %5323 = vpow2.f32 %v1912_v6  ;;  %v1911_v10 = vmul.f32 0.5, %v4658_v7  ;;  %4016 = vst [vmem:[%s7273_s11 + $0x18] sm:$0xff] %v4658_v7 }
 0x2c5   :  { %v1914_v11 = vmul.f32 1.442695, %v1911_v10 }
 0x2c7   :  { %5325 = vpow2.f32 %v1914_v11 }
 0x2cd   :  { %v5324_v15 = vpop.eup %5323 }
 0x2ce   :  { %v1916_v16 = vmul.f32 %v5324_v15, %v1908_v12 }
 0x2d0   :  { %v1918_v19 = vadd.f32 %v4655_v60, %v1916_v16  ;;  %v5098_v60 = vld [vmem:[%s7271_s7 + $0x354] ss:$28 sps:$4 sm:$0xff]  }
 0x2d1   :  { %v5326_v20 = vpop.eup %5325  ;;  %3701 = vmatprep.subr.bf16.mxu0 %v5098_v60  ;;  %v5132_v60 = vld [vmem:[%s7271_s7 + $0x4a0] ss:$28 sps:$4 sm:$0xff]  }
 0x2d2   :  { %4225 = vmatmul.mubr.msk.f32.vlgmr.msra.gmra.mrb[4].mxu1 %vm1954_vm2, %v1918_v19  ;;  %v1917_v49 = vmul.f32 %v5326_v20, %v1909_v18  ;;  %3702 = vmatpush1.bf16.msra.mxu0 %v5096_v62  ;;  %v5140_v62 = vld [vmem:[%s7271_s7 + $0x4dc] ss:$28 sps:$4 sm:$0xff]  }
 0x2d3   :  { %2044 = vmatprep.mubr.f32.mxu1 %v5342_v39  ;;  %4642 = vmatpush1.bf16.msra.mxu1 %v4641_v17 }
 0x2d4   :  { %v1919_v21 = vadd.f32 %v4657_v2, %v1917_v49  ;;  %4227 = vmatprep.subr.msk.mxu1 %vm1961_vm1, %v1931_v52  ;;  %3714 = vmatprep.subr.bf16.mxu0 %v5104_v0  ;;  %v1932_v2 = vld [vmem:[%s7275_s6] sm:$0xf]  ;;  %v5138_v0 = vld [vmem:[%s7271_s7 + $0x4d8] ss:$28 sps:$4 sm:$0xff]  }
 0x2d5   :  { %v1937_v5 = vrot.slane %v1932_v2, %v6236_v3  ;;  %v1941_v7 = vrot.slane %v1932_v2, %v6239_v4 }
 0x2d6   :  { %4226 = vmatmul.mubr.msk.f32.gmra.mrb[6].mxu1 %vm1954_vm2, %v1919_v21 }
 0x2d7   :  { %4228 = vmatpush1.msk.msra.mxu1 %vm1961_vm1, %v1930_v22  ;;  %2115 = vmatprep.mubr.f32.mxu1 %v5342_v39 }
 0x2d8   :  { %3585 = vmatprep.subr.bf16.mxu1 %v5005_v23 }
 0x2da   :  { %4229 = vmatmul.mubr.msk.f32.vlgmr.msra.gmra.mrb[8].mxu1 %vm1954_vm2, %v1918_v19  ;;  %v1945_v19 = vrot.slane %v1932_v2, %v6247_v8 }
 0x2db   :  { %2121 = vmatprep.mubr.f32.mxu1 %v5342_v39  ;;  %3586 = vmatpush1.bf16.msra.mxu1 %v5003_v24  ;;  %v5023_v39 = vld [vmem:[%s7271_s7 + $0xac] ss:$28 sps:$4 sm:$0xff]  }
 0x2dc   :  { %3587 = vmatprep.subr.bf16.mxu1 %v5011_v25  ;;  %v5099_v25 = vld [vmem:[%s7271_s7 + $0x380] ss:$28 sps:$4 sm:$0xff]  }
 0x2de   :  { %4230 = vmatmul.mubr.msk.f32.gmra.mrb[10].mxu1 %vm1954_vm2, %v1919_v21  ;;  %v1949_v21 = vrot.slane %v1932_v2, %v6250_v9  ;;  %v5143_v2 = vld [vmem:[%s7271_s7 + $0x50c] ss:$28 sps:$4 sm:$0xff]  }
 0x2df   :  { %3588 = vmatpush1.bf16.msra.mxu1 %v5009_v26  ;;  %v5102_v26 = vld [vmem:[%s7271_s7 + $0x388] ss:$28 sps:$4 sm:$0xff]  }
 0x2e0   :  { %3589 = vmatprep.subr.bf16.mxu1 %v5017_v27 }
 0x2e3   :  { %3590 = vmatpush1.bf16.msra.mxu1 %v5015_v28  ;;  %v5107_v28 = vld [vmem:[%s7271_s7 + $0x3bc] ss:$28 sps:$4 sm:$0xff]  }
 0x2e4   :  { %3591 = vmatprep.subr.bf16.mxu1 %v5023_v39  ;;  %v5110_v39 = vld [vmem:[%s7271_s7 + $0x3c4] ss:$28 sps:$4 sm:$0xff]  }
 0x2e7   :  { %3592 = vmatpush1.bf16.msra.mxu1 %v5021_v29 }
 0x2e8   :  { %3593 = vmatprep.subr.bf16.mxu1 %v5029_v30 }
 0x2eb   :  { %3594 = vmatpush1.bf16.msra.mxu1 %v5027_v31 }
 0x2ec   :  { %3595 = vmatprep.subr.bf16.mxu1 %v5035_v32 }
 0x2ef   :  { %3596 = vmatpush1.bf16.msra.mxu1 %v5033_v33 }
 0x2f0   :  { %3597 = vmatprep.subr.bf16.mxu1 %v5041_v34  ;;  %v5105_v34 = vld [vmem:[%s7271_s7 + $0x3b8] ss:$28 sps:$4 sm:$0xff]  }
 0x2f3   :  { %3598 = vmatpush1.bf16.msra.mxu1 %v5039_v35  ;;  %v5108_v35 = vld [vmem:[%s7271_s7 + $0x3c0] ss:$28 sps:$4 sm:$0xff]  }
 0x2f4   :  { %3599 = vmatprep.subr.bf16.mxu1 %v5047_v36 }
 0x2f7   :  { %3600 = vmatpush1.bf16.msra.mxu1 %v5045_v37 }
 0x2f8   :  { %3601 = vmatprep.subr.bf16.mxu1 %v5053_v38  ;;  %v5113_v38 = vld [vmem:[%s7271_s7 + $0x3f4] ss:$28 sps:$4 sm:$0xff]  }
 0x2fb   :  { %3602 = vmatpush1.bf16.msra.mxu1 %v5051_v40  ;;  %v5116_v40 = vld [vmem:[%s7271_s7 + $0x3fc] ss:$28 sps:$4 sm:$0xff]  }
 0x2fc   :  { %3603 = vmatprep.subr.bf16.mxu1 %v5059_v41 }
 0x2ff   :  { %3604 = vmatpush1.bf16.msra.mxu1 %v5057_v42 }
 0x300   :  { %3605 = vmatprep.subr.bf16.mxu1 %v5065_v43 }
 0x303   :  { %3606 = vmatpush1.bf16.msra.mxu1 %v5063_v44 }
 0x304   :  { %3607 = vmatprep.subr.bf16.mxu1 %v5071_v45  ;;  %v5111_v45 = vld [vmem:[%s7271_s7 + $0x3f0] ss:$28 sps:$4 sm:$0xff]  }
 0x307   :  { %3608 = vmatpush1.bf16.msra.mxu1 %v5069_v46  ;;  %v5114_v46 = vld [vmem:[%s7271_s7 + $0x3f8] ss:$28 sps:$4 sm:$0xff]  }
 0x308   :  { %3609 = vmatprep.subr.bf16.mxu1 %v5077_v47  ;;  %v5119_v47 = vld [vmem:[%s7271_s7 + $0x42c] ss:$28 sps:$4 sm:$0xff]  }
 0x30b   :  { %3610 = vmatpush1.bf16.msra.mxu1 %v5075_v48  ;;  %v5122_v48 = vld [vmem:[%s7271_s7 + $0x434] ss:$28 sps:$4 sm:$0xff]  }
 0x30c   :  { %3611 = vmatprep.subr.bf16.mxu1 %v5083_v50  ;;  %v5117_v50 = vld [vmem:[%s7271_s7 + $0x428] ss:$28 sps:$4 sm:$0xff]  }
 0x30f   :  { %3612 = vmatpush1.bf16.msra.mxu1 %v5081_v53  ;;  %v5125_v53 = vld [vmem:[%s7271_s7 + $0x464] ss:$28 sps:$4 sm:$0xff]  }
 0x310   :  { %3613 = vmatprep.subr.bf16.mxu1 %v5089_v55  ;;  %v5123_v55 = vld [vmem:[%s7271_s7 + $0x460] ss:$28 sps:$4 sm:$0xff]  }
 0x313   :  { %3614 = vmatpush1.bf16.msra.mxu1 %v5087_v57  ;;  %v5131_v57 = vld [vmem:[%s7271_s7 + $0x49c] ss:$28 sps:$4 sm:$0xff]  }
 0x314   :  { %3615 = vmatprep.subr.bf16.mxu1 %v5095_v59  ;;  %v5129_v59 = vld [vmem:[%s7271_s7 + $0x498] ss:$28 sps:$4 sm:$0xff]  }
 0x317   :  { %3616 = vmatpush1.bf16.msra.mxu1 %v5093_v61  ;;  %v5137_v61 = vld [vmem:[%s7271_s7 + $0x4d4] ss:$28 sps:$4 sm:$0xff]  }
 0x318   :  { %3628 = vmatprep.subr.bf16.mxu1 %v5101_v63  ;;  %v5135_v63 = vld [vmem:[%s7271_s7 + $0x4d0] ss:$28 sps:$4 sm:$0xff]  }
 0x3a5   :  { %v2040_v6 = vpop.f32.mrb[4].mxu1 }
 0x3a6   :  { %v2042_v10 = vpop.f32.mrb[5].mxu1  ;;  %v2041_v11 = vadd.f32 %v2040_v6, %v1937_v5  ;;  %v5141_v6 = vld [vmem:[%s7271_s7 + $0x508] ss:$28 sps:$4 sm:$0xff]  }
 0x3a7   :  { %v2043_v12 = vadd.f32 %v2042_v10, %v1941_v7  ;;  %v5149_v10 = vld [vmem:[%s7271_s7 + $0x544] ss:$28 sps:$4 sm:$0xff]  }
 0x3a8   :  { %v2128_v17 = vmax.f32 %v2041_v11, 0.0  ;;  %v5152_v11 = vld [vmem:[%s7271_s7 + $0x54c] ss:$28 sps:$4 sm:$0xff]  }
 0x3a9   :  { %v2046_v13 = vpop.f32.mrb[6].mxu1  ;;  %v2129_v20 = vmax.f32 %v2043_v12, 0.0  ;;  %v5147_v12 = vld [vmem:[%s7271_s7 + $0x540] ss:$28 sps:$4 sm:$0xff]  }
 0x3aa   :  { %v2047_v14 = vadd.f32 %v2046_v13, %v1937_v5  ;;  %v2048_v15 = vpop.f32.mrb[7].mxu1  ;;  %v5146_v5 = vld [vmem:[%s7271_s7 + $0x514] ss:$28 sps:$4 sm:$0xff]   ;;  %v5150_v13 = vld [vmem:[%s7271_s7 + $0x548] ss:$28 sps:$4 sm:$0xff]  }
 0x3ab   :  { %v2049_v16 = vadd.f32 %v2048_v15, %v1941_v7  ;;  %v5144_v7 = vld [vmem:[%s7271_s7 + $0x510] ss:$28 sps:$4 sm:$0xff]   ;;  %v5158_v15 = vld [vmem:[%s7271_s7 + $0x584] ss:$28 sps:$4 sm:$0xff]  }
 0x3ac   :  { %v2132_v18 = vmax.f32 %v2047_v14, 0.0  ;;  %v5155_v14 = vld [vmem:[%s7271_s7 + $0x57c] ss:$28 sps:$4 sm:$0xff]  }
 0x3ad   :  { %v2133_v52 = vmax.f32 %v2049_v16, 0.0  ;;  %v2117_v49 = vpop.f32.mrb[8].mxu1  ;;  %v5153_v16 = vld [vmem:[%s7271_s7 + $0x578] ss:$28 sps:$4 sm:$0xff]  }
 0x3ae   :  { %v6725_v22 = vpack.c.bf16 %v2132_v18, %v2128_v17  ;;  %v2119_v23 = vpop.f32.mrb[9].mxu1  ;;  %v2118_v27 = vadd.f32 %v2117_v49, %v1945_v19  ;;  %v5156_v17 = vld [vmem:[%s7271_s7 + $0x580] ss:$28 sps:$4 sm:$0xff]   ;;  %v5161_v18 = vld [vmem:[%s7271_s7 + $0x5b4] ss:$28 sps:$4 sm:$0xff]  }
 0x3af   :  { %v6727_v24 = vpack.c.bf16 %v2133_v52, %v2129_v20  ;;  %v2120_v29 = vadd.f32 %v2119_v23, %v1949_v21  ;;  %v5159_v20 = vld [vmem:[%s7271_s7 + $0x5b0] ss:$28 sps:$4 sm:$0xff]   ;;  %v5162_v52 = vld [vmem:[%s7271_s7 + $0x5b8] ss:$28 sps:$4 sm:$0xff]   ;;  %v5165_v23 = vld [vmem:[%s7271_s7 + $0x5e8] ss:$28 sps:$4 sm:$0xff]  }
 0x3b0   :  { %v2130_v36 = vmax.f32 %v2118_v27, 0.0  ;;  %v5167_v49 = vld [vmem:[%s7271_s7 + $0x5ec] ss:$28 sps:$4 sm:$0xff]  }
 0x3b1   :  { %v2123_v30 = vpop.f32.mrb[10].mxu1  ;;  %3617 = vmatprep.mubr.bf16.mxu1 %v6727_v24  ;;  %3703 = vmatprep.mubr.bf16.mxu0 %v6727_v24  ;;  %v2131_v41 = vmax.f32 %v2120_v29, 0.0  ;;  %v5176_v27 = vld [vmem:[%s7271_s7 + $0x62c] ss:$28 sps:$4 sm:$0xff]   ;;  %v5179_v29 = vld [vmem:[%s7271_s7 + $0x65c] ss:$28 sps:$4 sm:$0xff]  }
 0x3b2   :  { %v2124_v31 = vadd.f32 %v2123_v30, %v1945_v19  ;;  %v2125_v32 = vpop.f32.mrb[11].mxu1  ;;  %3618 = vmatmul.mubr.bf16.vlgmr.msra.gmra.mrb[12].mxu1 %v6725_v22  ;;  %3704 = vmatmul.mubr.bf16.vlgmr.msra.gmra.mrb[12].mxu0 %v6725_v22  ;;  %v5164_v19 = vld [vmem:[%s7271_s7 + $0x5bc] ss:$28 sps:$4 sm:$0xff]   ;;  %v5182_v30 = vld [vmem:[%s7271_s7 + $0x664] ss:$28 sps:$4 sm:$0xff]  }
 0x3b3   :  { %v2126_v33 = vadd.f32 %v2125_v32, %v1949_v21  ;;  %3629 = vmatpush1.bf16.msra.mxu1 %v5099_v25  ;;  %3715 = vmatpush1.bf16.msra.mxu0 %v5102_v26  ;;  %v5170_v21 = vld [vmem:[%s7271_s7 + $0x5f4] ss:$28 sps:$4 sm:$0xff]   ;;  %v5173_v26 = vld [vmem:[%s7271_s7 + $0x624] ss:$28 sps:$4 sm:$0xff]  }
 0x3b4   :  { %v2134_v37 = vmax.f32 %v2124_v31, 0.0  ;;  %3630 = vmatprep.subr.bf16.mxu1 %v5107_v28  ;;  %3716 = vmatprep.subr.bf16.mxu0 %v5110_v39  ;;  %v5168_v25 = vld [vmem:[%s7271_s7 + $0x5f0] ss:$28 sps:$4 sm:$0xff]   ;;  %v5171_v28 = vld [vmem:[%s7271_s7 + $0x620] ss:$28 sps:$4 sm:$0xff]  }
 0x3b5   :  { %v2135_v42 = vmax.f32 %v2126_v33, 0.0  ;;  %v5174_v39 = vld [vmem:[%s7271_s7 + $0x628] ss:$28 sps:$4 sm:$0xff]   ;;  %v5177_v31 = vld [vmem:[%s7271_s7 + $0x658] ss:$28 sps:$4 sm:$0xff]  }
 0x3b6   :  { %v6757_v43 = vpack.c.bf16 %v2134_v37, %v2130_v36  ;;  %v5180_v32 = vld [vmem:[%s7271_s7 + $0x660] ss:$28 sps:$4 sm:$0xff]   ;;  %v5185_v33 = vld [vmem:[%s7271_s7 + $0x694] ss:$28 sps:$4 sm:$0xff]   ;;  %v5191_v37 = vld [vmem:[%s7271_s7 + $0x6cc] ss:$28 sps:$4 sm:$0xff]  }
 0x3b7   :  { %v6759_v44 = vpack.c.bf16 %v2135_v42, %v2131_v41  ;;  %3631 = vmatpush1.bf16.msra.mxu1 %v5105_v34  ;;  %3717 = vmatpush1.bf16.msra.mxu0 %v5108_v35  ;;  %v5188_v34 = vld [vmem:[%s7271_s7 + $0x69c] ss:$28 sps:$4 sm:$0xff]   ;;  %v5183_v35 = vld [vmem:[%s7271_s7 + $0x690] ss:$28 sps:$4 sm:$0xff]  }
 0x3b8   :  { %3632 = vmatprep.subr.bf16.mxu1 %v5113_v38  ;;  %3718 = vmatprep.subr.bf16.mxu0 %v5116_v40  ;;  %v5186_v36 = vld [vmem:[%s7271_s7 + $0x698] ss:$28 sps:$4 sm:$0xff]   ;;  %v5189_v40 = vld [vmem:[%s7271_s7 + $0x6c8] ss:$28 sps:$4 sm:$0xff]   ;;  %v5192_v41 = vld [vmem:[%s7271_s7 + $0x6d0] ss:$28 sps:$4 sm:$0xff]  }
 0x3b9   :  { %3660 = vmatprep.mubr.bf16.mxu1 %v6759_v44  ;;  %3746 = vmatprep.mubr.bf16.mxu0 %v6759_v44  ;;  %v5194_v38 = vld [vmem:[%s7271_s7 + $0x6d4] ss:$28 sps:$4 sm:$0xff]  }
 0x3ba   :  { %v5197_v42 = vld [vmem:[%s7271_s7 + $0x14] ss:$28 sps:$4 sm:$0xff]  }
 0x3bb   :  { %3633 = vmatpush1.bf16.msra.mxu1 %v5111_v45  ;;  %3719 = vmatpush1.bf16.msra.mxu0 %v5114_v46  ;;  %v5198_v45 = vld [vmem:[%s7271_s7 + $0x1d8] ss:$28 sps:$4 sm:$0xff]   ;;  %v5195_v46 = vld [vmem:[%s7271_s7 + $0x10] ss:$28 sps:$4 sm:$0xff]  }
 0x3bc   :  { %3634 = vmatprep.subr.bf16.mxu1 %v5119_v47  ;;  %3720 = vmatprep.subr.bf16.mxu0 %v5122_v48  ;;  %v5199_v47 = vld [vmem:[%s7271_s7 + $0x18] ss:$28 sps:$4 sm:$0xff]   ;;  %v5202_v48 = vld [vmem:[%s7271_s7 + $0x4c] ss:$28 sps:$4 sm:$0xff]  }
 0x3bf   :  { %3635 = vmatpush1.bf16.msra.mxu1 %v5117_v50  ;;  %3721 = vmatpush1.bf16.msra.mxu0 %v5120_v51  ;;  %v5203_v50 = vld [vmem:[%s7271_s7 + $0x210] ss:$28 sps:$4 sm:$0xff]   ;;  %v5200_v51 = vld [vmem:[%s7271_s7 + $0x48] ss:$28 sps:$4 sm:$0xff]  }
 0x3c0   :  { %3636 = vmatprep.subr.bf16.mxu1 %v5125_v53  ;;  %3722 = vmatprep.subr.bf16.mxu0 %v5128_v54  ;;  %v5204_v53 = vld [vmem:[%s7271_s7 + $0x50] ss:$28 sps:$4 sm:$0xff]   ;;  %v5207_v54 = vld [vmem:[%s7271_s7 + $0x84] ss:$28 sps:$4 sm:$0xff]  }
 0x3c3   :  { %3637 = vmatpush1.bf16.msra.mxu1 %v5123_v55  ;;  %3723 = vmatpush1.bf16.msra.mxu0 %v5126_v56  ;;  %v5208_v55 = vld [vmem:[%s7271_s7 + $0x248] ss:$28 sps:$4 sm:$0xff]   ;;  %v5205_v56 = vld [vmem:[%s7271_s7 + $0x80] ss:$28 sps:$4 sm:$0xff]  }
 0x3c4   :  { %3638 = vmatprep.subr.bf16.mxu1 %v5131_v57  ;;  %3724 = vmatprep.subr.bf16.mxu0 %v5134_v58  ;;  %v5212_v57 = vld [vmem:[%s7271_s7 + $0xbc] ss:$28 sps:$4 sm:$0xff]  }
 0x3c5   :  { %v5213_v58 = vld [vmem:[%s7271_s7 + $0x280] ss:$28 sps:$4 sm:$0xff]  }
 0x3c7   :  { %3639 = vmatpush1.bf16.msra.mxu1 %v5129_v59  ;;  %3725 = vmatpush1.bf16.msra.mxu0 %v5132_v60  ;;  %v5210_v59 = vld [vmem:[%s7271_s7 + $0xb8] ss:$28 sps:$4 sm:$0xff]   ;;  %v5214_v60 = vld [vmem:[%s7271_s7 + $0xc0] ss:$28 sps:$4 sm:$0xff]  }
 0x3c8   :  { %3640 = vmatprep.subr.bf16.mxu1 %v5137_v61  ;;  %3726 = vmatprep.subr.bf16.mxu0 %v5140_v62  ;;  %v5217_v61 = vld [vmem:[%s7271_s7 + $0xf4] ss:$28 sps:$4 sm:$0xff]  }
 0x3c9   :  { %v5218_v62 = vld [vmem:[%s7271_s7 + $0x2b8] ss:$28 sps:$4 sm:$0xff]  }
 0x3cb   :  { %3641 = vmatpush1.bf16.msra.mxu1 %v5135_v63  ;;  %3727 = vmatpush1.bf16.msra.mxu0 %v5138_v0  ;;  %v5215_v63 = vld [vmem:[%s7271_s7 + $0xf0] ss:$28 sps:$4 sm:$0xff]   ;;  %v5219_v0 = vld [vmem:[%s7271_s7 + $0xf8] ss:$28 sps:$4 sm:$0xff]  }
 0x3cc   :  { %3642 = vmatprep.subr.bf16.mxu1 %v5143_v2  ;;  %3728 = vmatprep.subr.bf16.mxu0 %v5146_v5  ;;  %v5222_v2 = vld [vmem:[%s7271_s7 + $0x12c] ss:$28 sps:$4 sm:$0xff]  }
 0x3cd   :  { %v5223_v5 = vld [vmem:[%s7271_s7 + $0x2f0] ss:$28 sps:$4 sm:$0xff]  }
 0x3cf   :  { %3643 = vmatpush1.bf16.msra.mxu1 %v5141_v6  ;;  %3729 = vmatpush1.bf16.msra.mxu0 %v5144_v7  ;;  %v5220_v6 = vld [vmem:[%s7271_s7 + $0x128] ss:$28 sps:$4 sm:$0xff]   ;;  %v5224_v7 = vld [vmem:[%s7271_s7 + $0x130] ss:$28 sps:$4 sm:$0xff]  }
 0x3d0   :  { %3644 = vmatprep.subr.bf16.mxu1 %v5149_v10  ;;  %3730 = vmatprep.subr.bf16.mxu0 %v5152_v11  ;;  %v5227_v10 = vld [vmem:[%s7271_s7 + $0x164] ss:$28 sps:$4 sm:$0xff]  }
 0x3d1   :  { %v5228_v11 = vld [vmem:[%s7271_s7 + $0x328] ss:$28 sps:$4 sm:$0xff]  }
 0x3d3   :  { %3645 = vmatpush1.bf16.msra.mxu1 %v5147_v12  ;;  %3731 = vmatpush1.bf16.msra.mxu0 %v5150_v13  ;;  %v5225_v12 = vld [vmem:[%s7271_s7 + $0x160] ss:$28 sps:$4 sm:$0xff]   ;;  %v5229_v13 = vld [vmem:[%s7271_s7 + $0x168] ss:$28 sps:$4 sm:$0xff]  }
 0x3d4   :  { %3646 = vmatprep.subr.bf16.mxu1 %v5155_v14  ;;  %3732 = vmatprep.subr.bf16.mxu0 %v5158_v15  ;;  %v5232_v14 = vld [vmem:[%s7271_s7 + $0x19c] ss:$28 sps:$4 sm:$0xff]  }
 0x3d5   :  { %v5233_v15 = vld [vmem:[%s7271_s7 + $0x360] ss:$28 sps:$4 sm:$0xff]  }
 0x3d7   :  { %3647 = vmatpush1.bf16.msra.mxu1 %v5153_v16  ;;  %3733 = vmatpush1.bf16.msra.mxu0 %v5156_v17  ;;  %v5230_v16 = vld [vmem:[%s7271_s7 + $0x198] ss:$28 sps:$4 sm:$0xff]   ;;  %v5234_v17 = vld [vmem:[%s7271_s7 + $0x1a0] ss:$28 sps:$4 sm:$0xff]  }
 0x3d8   :  { %3648 = vmatprep.subr.bf16.mxu1 %v5161_v18  ;;  %3734 = vmatprep.subr.bf16.mxu0 %v5164_v19  ;;  %v5237_v18 = vld [vmem:[%s7271_s7 + $0x1d4] ss:$28 sps:$4 sm:$0xff]  }
 0x3d9   :  { %v5235_v19 = vld [vmem:[%s7271_s7 + $0x1d0] ss:$28 sps:$4 sm:$0xff]  }
 0x3db   :  { %3649 = vmatpush1.bf16.msra.mxu1 %v5159_v20  ;;  %3735 = vmatpush1.bf16.msra.mxu0 %v5162_v52  ;;  %v5240_v20 = vld [vmem:[%s7271_s7 + $0x20c] ss:$28 sps:$4 sm:$0xff]  }
 0x3dc   :  { %3650 = vmatprep.subr.bf16.mxu1 %v5167_v49  ;;  %3736 = vmatprep.subr.bf16.mxu0 %v5170_v21  ;;  %v5238_v52 = vld [vmem:[%s7271_s7 + $0x208] ss:$28 sps:$4 sm:$0xff]   ;;  %v5241_v21 = vld [vmem:[%s7271_s7 + $0x240] ss:$28 sps:$4 sm:$0xff]  }
 0x3dd   :  { %v5243_v49 = vld [vmem:[%s7271_s7 + $0x244] ss:$28 sps:$4 sm:$0xff]  }
 0x3df   :  { %3651 = vmatpush1.bf16.msra.mxu1 %v5165_v23  ;;  %3737 = vmatpush1.bf16.msra.mxu0 %v5168_v25  ;;  %v5246_v23 = vld [vmem:[%s7271_s7 + $0x27c] ss:$28 sps:$4 sm:$0xff]  }
 0x3e0   :  { %3652 = vmatprep.subr.bf16.mxu1 %v5173_v26  ;;  %3738 = vmatprep.subr.bf16.mxu0 %v5176_v27  ;;  %v5244_v25 = vld [vmem:[%s7271_s7 + $0x278] ss:$28 sps:$4 sm:$0xff]   ;;  %v5247_v27 = vld [vmem:[%s7271_s7 + $0x2b0] ss:$28 sps:$4 sm:$0xff]  }
 0x3e1   :  { %v5249_v26 = vld [vmem:[%s7271_s7 + $0x2b4] ss:$28 sps:$4 sm:$0xff]  }
 0x3e3   :  { %3653 = vmatpush1.bf16.msra.mxu1 %v5171_v28  ;;  %3739 = vmatpush1.bf16.msra.mxu0 %v5174_v39  ;;  %v5252_v28 = vld [vmem:[%s7271_s7 + $0x2ec] ss:$28 sps:$4 sm:$0xff]  }
 0x3e4   :  { %3654 = vmatprep.subr.bf16.mxu1 %v5179_v29  ;;  %3740 = vmatprep.subr.bf16.mxu0 %v5182_v30  ;;  %v5250_v39 = vld [vmem:[%s7271_s7 + $0x2e8] ss:$28 sps:$4 sm:$0xff]   ;;  %v5253_v30 = vld [vmem:[%s7271_s7 + $0x320] ss:$28 sps:$4 sm:$0xff]  }
 0x3e5   :  { %v5255_v29 = vld [vmem:[%s7271_s7 + $0x324] ss:$28 sps:$4 sm:$0xff]  }
 0x3e7   :  { %3655 = vmatpush1.bf16.msra.mxu1 %v5177_v31  ;;  %3741 = vmatpush1.bf16.msra.mxu0 %v5180_v32  ;;  %v5258_v31 = vld [vmem:[%s7271_s7 + $0x35c] ss:$28 sps:$4 sm:$0xff]  }
 0x3e8   :  { %3656 = vmatprep.subr.bf16.mxu1 %v5185_v33  ;;  %3742 = vmatprep.subr.bf16.mxu0 %v5188_v34  ;;  %v5256_v32 = vld [vmem:[%s7271_s7 + $0x358] ss:$28 sps:$4 sm:$0xff]   ;;  %v5259_v34 = vld [vmem:[%s7271_s7 + $0x390] ss:$28 sps:$4 sm:$0xff]  }
 0x3e9   :  { %v5261_v33 = vld [vmem:[%s7271_s7 + $0x394] ss:$28 sps:$4 sm:$0xff]  }
 0x3eb   :  { %3657 = vmatpush1.bf16.msra.mxu1 %v5183_v35  ;;  %3743 = vmatpush1.bf16.msra.mxu0 %v5186_v36  ;;  %v5264_v35 = vld [vmem:[%s7271_s7 + $0x3cc] ss:$28 sps:$4 sm:$0xff]  }
 0x3ec   :  { %3658 = vmatprep.subr.bf16.mxu1 %v5191_v37  ;;  %3744 = vmatprep.subr.bf16.mxu0 %v5194_v38  ;;  %v5262_v36 = vld [vmem:[%s7271_s7 + $0x3c8] ss:$28 sps:$4 sm:$0xff]   ;;  %v5265_v38 = vld [vmem:[%s7271_s7 + $0x400] ss:$28 sps:$4 sm:$0xff]  }
 0x3ed   :  { %v5267_v37 = vld [vmem:[%s7271_s7 + $0x404] ss:$28 sps:$4 sm:$0xff]  }
 0x3ef   :  { %3659 = vmatpush1.bf16.msra.mxu1 %v5189_v40  ;;  %3745 = vmatpush1.bf16.msra.mxu0 %v5192_v41  ;;  %v5268_v40 = vld [vmem:[%s7271_s7 + $0x438] ss:$28 sps:$4 sm:$0xff]  }
 0x3f0   :  { %3757 = vmatprep.subr.bf16.mxu1 %v5197_v42  ;;  %4463 = vmatprep.subr.bf16.mxu0 %v5198_v45  ;;  %v5273_v41 = vld [vmem:[%s7271_s7 + $0x474] ss:$28 sps:$4 sm:$0xff]   ;;  %v5276_v45 = vld [vmem:[%s7271_s7 + $0x4ac] ss:$28 sps:$4 sm:$0xff]  }
 0x3f1   :  { %v5271_v42 = vld [vmem:[%s7271_s7 + $0x470] ss:$28 sps:$4 sm:$0xff]  }
 0x3f2   :  { %3661 = vmatmul.mubr.bf16.vlgmr.msra.gmra.mrb[12].mxu1 %v6757_v43  ;;  %3747 = vmatmul.mubr.bf16.vlgmr.msra.gmra.mrb[12].mxu0 %v6757_v43 }
 0x3f3   :  { %3758 = vmatpush1.bf16.msra.mxu1 %v5195_v46  ;;  %3789 = vmatprep.mubr.bf16.mxu1 %v6727_v24  ;;  %v5274_v46 = vld [vmem:[%s7271_s7 + $0x4a8] ss:$28 sps:$4 sm:$0xff]  }
 0x3f4   :  { %4464 = vmatpush3.bf16.msra.mxu0 %v5199_v47  ;;  %3875 = vmatprep.mubr.bf16.mxu0 %v6727_v24  ;;  %v5209_v24 = vld [vmem:[%s7271_s7 + $0x88] ss:$28 sps:$4 sm:$0xff]  }
 0x3f5   :  { %3759 = vmatprep.subr.bf16.mxu1 %v5202_v48  ;;  %4465 = vmatprep.subr.bf16.mxu0 %v5203_v50  ;;  %v5279_v47 = vld [vmem:[%s7271_s7 + $0x4e4] ss:$28 sps:$4 sm:$0xff]   ;;  %v5282_v50 = vld [vmem:[%s7271_s7 + $0x51c] ss:$28 sps:$4 sm:$0xff]  }
 0x3f6   :  { %v5277_v48 = vld [vmem:[%s7271_s7 + $0x4e0] ss:$28 sps:$4 sm:$0xff]  }
 0x3f7   :  { %3760 = vmatpush1.bf16.msra.mxu1 %v5200_v51  ;;  %v5280_v51 = vld [vmem:[%s7271_s7 + $0x518] ss:$28 sps:$4 sm:$0xff]  }
 0x3f8   :  { %4466 = vmatpush3.bf16.msra.mxu0 %v5204_v53  ;;  %3761 = vmatprep.subr.bf16.mxu1 %v5207_v54  ;;  %v5285_v53 = vld [vmem:[%s7271_s7 + $0x554] ss:$28 sps:$4 sm:$0xff]  }
 0x3f9   :  { %4467 = vmatprep.subr.bf16.mxu0 %v5208_v55  ;;  %v5283_v54 = vld [vmem:[%s7271_s7 + $0x550] ss:$28 sps:$4 sm:$0xff]  }
 0x3fa   :  { %v5288_v55 = vld [vmem:[%s7271_s7 + $0x58c] ss:$28 sps:$4 sm:$0xff]  }
 0x3fb   :  { %3762 = vmatpush1.bf16.msra.mxu1 %v5205_v56  ;;  %v5286_v56 = vld [vmem:[%s7271_s7 + $0x588] ss:$28 sps:$4 sm:$0xff]  }
 0x3fc   :  { %4468 = vmatpush3.bf16.msra.mxu0 %v5209_v24  ;;  %3763 = vmatprep.subr.bf16.mxu1 %v5212_v57  ;;  %v5291_v24 = vld [vmem:[%s7271_s7 + $0x5c4] ss:$28 sps:$4 sm:$0xff]  }
 0x3fd   :  { %4469 = vmatprep.subr.bf16.mxu0 %v5213_v58  ;;  %v5289_v57 = vld [vmem:[%s7271_s7 + $0x5c0] ss:$28 sps:$4 sm:$0xff]  }
 0x3fe   :  { %v5294_v58 = vld [vmem:[%s7271_s7 + $0x5fc] ss:$28 sps:$4 sm:$0xff]  }
 0x3ff   :  { %3764 = vmatpush1.bf16.msra.mxu1 %v5210_v59  ;;  %v5292_v59 = vld [vmem:[%s7271_s7 + $0x5f8] ss:$28 sps:$4 sm:$0xff]  }
 0x400   :  { %4470 = vmatpush3.bf16.msra.mxu0 %v5214_v60  ;;  %3765 = vmatprep.subr.bf16.mxu1 %v5217_v61  ;;  %v5297_v60 = vld [vmem:[%s7271_s7 + $0x634] ss:$28 sps:$4 sm:$0xff]  }
 0x401   :  { %4471 = vmatprep.subr.bf16.mxu0 %v5218_v62  ;;  %v5295_v61 = vld [vmem:[%s7271_s7 + $0x630] ss:$28 sps:$4 sm:$0xff]  }
 0x402   :  { %v5300_v62 = vld [vmem:[%s7271_s7 + $0x66c] ss:$28 sps:$4 sm:$0xff]  }
 0x403   :  { %3766 = vmatpush1.bf16.msra.mxu1 %v5215_v63  ;;  %v5298_v63 = vld [vmem:[%s7271_s7 + $0x668] ss:$28 sps:$4 sm:$0xff]  }
 0x404   :  { %4472 = vmatpush3.bf16.msra.mxu0 %v5219_v0  ;;  %3767 = vmatprep.subr.bf16.mxu1 %v5222_v2  ;;  %v5303_v0 = vld [vmem:[%s7271_s7 + $0x6a4] ss:$28 sps:$4 sm:$0xff]  }
 0x405   :  { %4473 = vmatprep.subr.bf16.mxu0 %v5223_v5  ;;  %v5301_v2 = vld [vmem:[%s7271_s7 + $0x6a0] ss:$28 sps:$4 sm:$0xff]  }
 0x406   :  { %v5306_v5 = vld [vmem:[%s7271_s7 + $0x6dc] ss:$28 sps:$4 sm:$0xff]  }
 0x407   :  { %3768 = vmatpush1.bf16.msra.mxu1 %v5220_v6  ;;  %v5304_v6 = vld [vmem:[%s7271_s7 + $0x6d8] ss:$28 sps:$4 sm:$0xff]  }
 0x408   :  { %4474 = vmatpush3.bf16.msra.mxu0 %v5224_v7  ;;  %3769 = vmatprep.subr.bf16.mxu1 %v5227_v10  ;;  %v5307_v7 = vld [vmem:[%s7271_s7 + $0x558] ss:$28 sps:$4 sm:$0xff]  }
 0x409   :  { %4475 = vmatprep.subr.bf16.mxu0 %v5228_v11  ;;  %v5308_v10 = vld [vmem:[%s7271_s7 + $0x398] ss:$28 sps:$4 sm:$0xff]   ;;  %v5309_v11 = vld [vmem:[%s7271_s7 + $0x590] ss:$28 sps:$4 sm:$0xff]  }
 0x40b   :  { %3770 = vmatpush1.bf16.msra.mxu1 %v5225_v12  ;;  %v5310_v12 = vld [vmem:[%s7271_s7 + $0x3d0] ss:$28 sps:$4 sm:$0xff]  }
 0x40c   :  { %4476 = vmatpush3.bf16.msra.mxu0 %v5229_v13  ;;  %3771 = vmatprep.subr.bf16.mxu1 %v5232_v14  ;;  %v5311_v13 = vld [vmem:[%s7271_s7 + $0x5c8] ss:$28 sps:$4 sm:$0xff]  }
 0x40d   :  { %4477 = vmatprep.subr.bf16.mxu0 %v5233_v15  ;;  %v5312_v14 = vld [vmem:[%s7271_s7 + $0x408] ss:$28 sps:$4 sm:$0xff]   ;;  %v5313_v15 = vld [vmem:[%s7271_s7 + $0x600] ss:$28 sps:$4 sm:$0xff]  }
 0x40f   :  { %3772 = vmatpush1.bf16.msra.mxu1 %v5230_v16  ;;  %v5315_v16 = vld [vmem:[%s7271_s7 + $0x638] ss:$28 sps:$4 sm:$0xff]  }
 0x410   :  { %4478 = vmatpush3.bf16.msra.mxu0 %v5234_v17  ;;  %3773 = vmatprep.subr.bf16.mxu1 %v5237_v18  ;;  %v5316_v17 = vld [vmem:[%s7271_s7 + $0x478] ss:$28 sps:$4 sm:$0xff]   ;;  %v5317_v18 = vld [vmem:[%s7271_s7 + $0x670] ss:$28 sps:$4 sm:$0xff]  }
 0x413   :  { %3876 = vmatmul.mubr.bf16.vlgmr.msra.gmra.mrb[16].mxu0 %v6725_v22  ;;  %3774 = vmatpush1.bf16.msra.mxu1 %v5235_v19  ;;  %v5318_v19 = vld [vmem:[%s7271_s7 + $0x4b0] ss:$28 sps:$4 sm:$0xff]  }
 0x414   :  { %3775 = vmatprep.subr.bf16.mxu1 %v5240_v20  ;;  %v5319_v20 = vld [vmem:[%s7271_s7 + $0x6a8] ss:$28 sps:$4 sm:$0xff]  }
 0x417   :  { %3776 = vmatpush1.bf16.msra.mxu1 %v5238_v52  ;;  %v5320_v52 = vld [vmem:[%s7271_s7 + $0x4e8] ss:$28 sps:$4 sm:$0xff]  }
 0x418   :  { %3777 = vmatprep.subr.bf16.mxu1 %v5243_v49  ;;  %v5321_v49 = vld [vmem:[%s7271_s7 + $0x6e0] ss:$28 sps:$4 sm:$0xff]  }
 0x41b   :  { %3778 = vmatpush1.bf16.msra.mxu1 %v5241_v21  ;;  %v5322_v21 = vld [vmem:[%s7271_s7 + $0x520] ss:$28 sps:$4 sm:$0xff]  }
 0x41c   :  { %3779 = vmatprep.subr.bf16.mxu1 %v5246_v23  ;;  %v7226_v23 = vld [vmem:[%s7276_s8] sm:$0x7f] }
 0x41f   :  { %3780 = vmatpush1.bf16.msra.mxu1 %v5244_v25  ;;  %v2401_v25 = vrot.slane %v7226_v23, %v6236_v3 }
 0x420   :  { %3781 = vmatprep.subr.bf16.mxu1 %v5249_v26  ;;  %v2409_v26 = vrot.slane %v7226_v23, %v6247_v8 }
 0x423   :  { %3782 = vmatpush1.bf16.msra.mxu1 %v5247_v27  ;;  %v2405_v27 = vrot.slane %v7226_v23, %v6239_v4 }
 0x424   :  { %3783 = vmatprep.subr.bf16.mxu1 %v5252_v28  ;;  %v2413_v28 = vrot.slane %v7226_v23, %v6250_v9 }
 0x427   :  { %3784 = vmatpush1.bf16.msra.mxu1 %v5250_v39 }
 0x428   :  { %3785 = vmatprep.subr.bf16.mxu1 %v5255_v29 }
 0x42b   :  { %3786 = vmatpush1.bf16.msra.mxu1 %v5253_v30 }
 0x42c   :  { %3787 = vmatprep.subr.bf16.mxu1 %v5258_v31 }
 0x42f   :  { %3788 = vmatpush1.bf16.msra.mxu1 %v5256_v32 }
 0x430   :  { %3800 = vmatprep.subr.bf16.mxu1 %v5261_v33 }
 0x432   :  { %3790 = vmatmul.mubr.bf16.vlgmr.msra.gmra.mrb[16].mxu1 %v6725_v22  ;;  %v5270_v22 = vld [vmem:[%s7271_s7 + $0x43c] ss:$28 sps:$4 sm:$0xff]  }
 0x433   :  { %3801 = vmatpush1.bf16.msra.mxu1 %v5259_v34  ;;  %3832 = vmatprep.mubr.bf16.mxu1 %v6759_v44 }
 0x434   :  { %3802 = vmatprep.subr.bf16.mxu1 %v5264_v35 }
 0x437   :  { %3803 = vmatpush1.bf16.msra.mxu1 %v5262_v36 }
 0x438   :  { %3804 = vmatprep.subr.bf16.mxu1 %v5267_v37 }
 0x43b   :  { %3805 = vmatpush1.bf16.msra.mxu1 %v5265_v38 }
 0x43c   :  { %3806 = vmatprep.subr.bf16.mxu1 %v5270_v22 }
 0x43f   :  { %3807 = vmatpush1.bf16.msra.mxu1 %v5268_v40 }
 0x440   :  { %3808 = vmatprep.subr.bf16.mxu1 %v5273_v41 }
 0x443   :  { %3809 = vmatpush1.bf16.msra.mxu1 %v5271_v42 }
 0x444   :  { %3810 = vmatprep.subr.bf16.mxu1 %v5276_v45 }
 0x447   :  { %3811 = vmatpush1.bf16.msra.mxu1 %v5274_v46 }
 0x448   :  { %3812 = vmatprep.subr.bf16.mxu1 %v5279_v47 }
 0x44b   :  { %3813 = vmatpush1.bf16.msra.mxu1 %v5277_v48 }
 0x44c   :  { %3814 = vmatprep.subr.bf16.mxu1 %v5282_v50 }
 0x44f   :  { %3815 = vmatpush1.bf16.msra.mxu1 %v5280_v51 }
 0x450   :  { %3816 = vmatprep.subr.bf16.mxu1 %v5285_v53 }
 0x453   :  { %3817 = vmatpush1.bf16.msra.mxu1 %v5283_v54 }
 0x454   :  { %3818 = vmatprep.subr.bf16.mxu1 %v5288_v55 }
 0x457   :  { %3819 = vmatpush1.bf16.msra.mxu1 %v5286_v56 }
 0x458   :  { %3820 = vmatprep.subr.bf16.mxu1 %v5291_v24 }
 0x45b   :  { %3821 = vmatpush1.bf16.msra.mxu1 %v5289_v57 }
 0x45c   :  { %3822 = vmatprep.subr.bf16.mxu1 %v5294_v58 }
 0x45f   :  { %3823 = vmatpush1.bf16.msra.mxu1 %v5292_v59 }
 0x460   :  { %3824 = vmatprep.subr.bf16.mxu1 %v5297_v60 }
 0x463   :  { %3825 = vmatpush1.bf16.msra.mxu1 %v5295_v61 }
 0x464   :  { %3826 = vmatprep.subr.bf16.mxu1 %v5300_v62 }
 0x467   :  { %3827 = vmatpush1.bf16.msra.mxu1 %v5298_v63 }
 0x468   :  { %3828 = vmatprep.subr.bf16.mxu1 %v5303_v0 }
 0x46b   :  { %3829 = vmatpush1.bf16.msra.mxu1 %v5301_v2 }
 0x46c   :  { %3830 = vmatprep.subr.bf16.mxu1 %v5306_v5 }
 0x46f   :  { %3831 = vmatpush1.bf16.msra.mxu1 %v5304_v6 }
 0x470   :  { %4485 = vmatprep.subr.bf16.mxu1 %v5307_v7 }
 0x472   :  { %3833 = vmatmul.mubr.bf16.vlgmr.msra.gmra.mrb[16].mxu1 %v6757_v43 }
 0x473   :  { %4486 = vmatpush3.bf16.msra.mxu1 %v5308_v10  ;;  %3916 = vmatprep.mubr.bf16.mxu1 %v6759_v44  ;;  %v5314_v44 = vld [vmem:[%s7271_s7 + $0x440] ss:$28 sps:$4 sm:$0xff]  }
 0x474   :  { %4487 = vmatprep.subr.bf16.mxu1 %v5309_v11 }
 0x477   :  { %4488 = vmatpush3.bf16.msra.mxu1 %v5310_v12 }
 0x478   :  { %4489 = vmatprep.subr.bf16.mxu1 %v5311_v13 }
 0x47b   :  { %4490 = vmatpush3.bf16.msra.mxu1 %v5312_v14 }
 0x47c   :  { %4491 = vmatprep.subr.bf16.mxu1 %v5313_v15 }
 0x47f   :  { %4492 = vmatpush3.bf16.msra.mxu1 %v5314_v44 }
 0x480   :  { %4493 = vmatprep.subr.bf16.mxu1 %v5315_v16  ;;  %v2416_v16 = vsub.s32 4, %v6233_v1 }
 0x483   :  { %4494 = vmatpush3.bf16.msra.mxu1 %v5316_v17  ;;  %v2420_v17 = vsub.s32 5, %v6233_v1 }
 0x484   :  { %4495 = vmatprep.subr.bf16.mxu1 %v5317_v18  ;;  %v2417_v18 = vrot.slane %v7226_v23, %v2416_v16 }
 0x487   :  { %4496 = vmatpush3.bf16.msra.mxu1 %v5318_v19  ;;  %v2421_v19 = vrot.slane %v7226_v23, %v2420_v17 }
 0x488   :  { %4497 = vmatprep.subr.bf16.mxu1 %v5319_v20 }
 0x48b   :  { %4498 = vmatpush3.bf16.msra.mxu1 %v5320_v52 }
 0x48c   :  { %4499 = vmatprep.subr.bf16.mxu1 %v5321_v49 }
 0x48f   :  { %4500 = vmatpush3.bf16.msra.mxu1 %v5322_v21 }
 0x492   :  { %3917 = vmatmul.mubr.bf16.vlgmr.msra.gmra.mrb[20].mxu1 %v6757_v43 }
 0x4c5   :  { %v3662_v39 = vpop.f32.mrb[12].mxu1  ;;  %v3748_v29 = vpop.f32.mrb[12].mxu0 }
 0x4c6   :  { %v4659_v43 = vadd.f32 %v3662_v39, %v2401_v25  ;;  %v4663_v30 = vadd.f32 %v3748_v29, %v2409_v26  ;;  %v3664_v31 = vpop.f32.mrb[13].mxu1  ;;  %v3750_v32 = vpop.f32.mrb[13].mxu0 }
 0x4c7   :  { %v4660_v33 = vadd.f32 %v3664_v31, %v2405_v27  ;;  %v4664_v34 = vadd.f32 %v3750_v32, %v2413_v28  ;;  %v3666_v35 = vpop.f32.mrb[14].mxu1  ;;  %v3752_v36 = vpop.f32.mrb[14].mxu0 }
 0x4c8   :  { %v4661_v3 = vadd.f32 %v3666_v35, %v2401_v25  ;;  %v4665_v37 = vadd.f32 %v3752_v36, %v2409_v26  ;;  %v3668_v38 = vpop.f32.mrb[15].mxu1  ;;  %v3754_v8 = vpop.f32.mrb[15].mxu0  ;;  %v3925_v4 = vmul.f32 0.5, %v4659_v43  ;;  %v3927_v41 = vmul.f32 0.5, %v4663_v30 }
 0x4c9   :  { %v4662_v22 = vadd.f32 %v3668_v38, %v2405_v27  ;;  %v4666_v40 = vadd.f32 %v3754_v8, %v2413_v28  ;;  %v3926_v45 = vmul.f32 0.5, %v4660_v33  ;;  %v3928_v46 = vmul.f32 0.5, %v4664_v34 }
 0x4ca   :  { %v3932_v42 = vmul.f32 0.5, %v4661_v3  ;;  %v3934_v9 = vmul.f32 0.5, %v4665_v37  ;;  %v2424_v38 = vsub.s32 6, %v6233_v1 }
 0x4cb   :  { %v3933_v47 = vmul.f32 0.5, %v4662_v22  ;;  %v3935_v48 = vmul.f32 0.5, %v4666_v40 }
 0x4cc   :  { %v3939_v50 = vpack.c.bf16 %v3932_v42, %v3925_v4  ;;  %v3941_v51 = vpack.c.bf16 %v3934_v9, %v3927_v41  ;;  %v2425_v40 = vrot.slane %v7226_v23, %v2424_v38 }
 0x4cd   :  { %v3940_v53 = vpack.c.bf16 %v3933_v47, %v3926_v45  ;;  %v3942_v54 = vpack.c.bf16 %v3935_v48, %v3928_v46 }
 0x4ce   :  { %5327 = vtanh.bf16 %v3939_v50 }
 0x4cf   :  { %5329 = vtanh.bf16 %v3941_v51 }
 0x4d0   :  { %5331 = vtanh.bf16 %v3940_v53 }
 0x4d1   :  { %5333 = vtanh.bf16 %v3942_v54 }
 0x4d9   :  { %v5328_v55 = vpop.eup %5327 }
 0x4da   :  { %v5330_v56 = vpop.eup %5329  ;;  %v3953_v24 = vmul.bf16 1056980736, %v5328_v55 }
 0x4db   :  { %v5332_v57 = vpop.eup %5331  ;;  %v3955_v58 = vmul.bf16 1056980736, %v5330_v56 }
 0x4dc   :  { %v5334_v59 = vpop.eup %5333  ;;  %v3960_v60 = vadd.bf16 1056980736, %v3953_v24  ;;  %v3954_v61 = vmul.bf16 1056980736, %v5332_v57 }
 0x4dd   :  { %v3962_v62 = vadd.bf16 1056980736, %v3955_v58  ;;  %v3956_v63 = vmul.bf16 1056980736, %v5334_v59 }
 0x4de   :  { %v3961_v0 = vadd.bf16 1056980736, %v3954_v61 }
 0x4df   :  { %v3963_v2 = vadd.bf16 1056980736, %v3956_v63 }
 0x4e0   :  { %v4455_v5 = vcombine.low %v3960_v60, %v3961_v0  ;;  %v4459_v6 = vcombine.high %v3960_v60, %v3961_v0 }
 0x4e1   :  { %v4456_v7 = vcombine.low %v3962_v62, %v3963_v2  ;;  %v4460_v10 = vcombine.high %v3962_v62, %v3963_v2 }
 0x4e2   :  { %4004 = vst [vmem:[%s7277_s10] sm:$0xff] %v4455_v5  ;;  %4009 = vst [vmem:[%s7277_s10 + $0x1c] sm:$0xff] %v4459_v6 }
 0x4e3   :  { %4005 = vst [vmem:[%s7277_s10 + $0x8] sm:$0xff] %v4456_v7  ;;  %4010 = vst [vmem:[%s7277_s10 + $0x24] sm:$0xff] %v4460_v10 }
 0x4e6   :  { %v4479_v11 = vpop.f32.mrb[16].mxu0 }
 0x4e7   :  { %v4480_v12 = vpop.f32.mrb[17].mxu0 }
 0x4e8   :  { %v4481_v13 = vadd.f32 %v4480_v12, %v4479_v11  ;;  %v4482_v14 = vpop.f32.mrb[18].mxu0 }
 0x4e9   :  { %v4483_v15 = vpop.f32.mrb[19].mxu0 }
 0x4ea   :  { %v4484_v44 = vadd.f32 %v4483_v15, %v4482_v14  ;;  %v3878_v42 = vadd.f32 %v4481_v13, %v2425_v40 }
 0x4ec   :  { %v3881_v47 = vadd.f32 %v4484_v44, %v2425_v40 }
 0x545   :  { %v3834_v20 = vpop.f32.mrb[16].mxu1 }
 0x546   :  { %v4667_v52 = vadd.f32 %v3834_v20, %v2417_v18  ;;  %v3836_v49 = vpop.f32.mrb[17].mxu1 }
 0x547   :  { %v4668_v21 = vadd.f32 %v3836_v49, %v2421_v19  ;;  %v3838_v25 = vpop.f32.mrb[18].mxu1 }
 0x548   :  { %v4669_v26 = vadd.f32 %v3838_v25, %v2417_v18  ;;  %v3840_v27 = vpop.f32.mrb[19].mxu1  ;;  %v3929_v39 = vmul.f32 0.5, %v4667_v52 }
 0x549   :  { %v4670_v28 = vadd.f32 %v3840_v27, %v2421_v19  ;;  %v3930_v43 = vmul.f32 0.5, %v4668_v21 }
 0x54a   :  { %v3936_v29 = vmul.f32 0.5, %v4669_v26 }
 0x54b   :  { %v3937_v30 = vmul.f32 0.5, %v4670_v28 }
 0x54c   :  { %v3943_v31 = vpack.c.bf16 %v3936_v29, %v3929_v39 }
 0x54d   :  { %v3944_v32 = vpack.c.bf16 %v3937_v30, %v3930_v43 }
 0x54e   :  { %5335 = vtanh.bf16 %v3943_v31 }
 0x54f   :  { %5337 = vtanh.bf16 %v3944_v32 }
 0x559   :  { %v5336_v33 = vpop.eup %5335 }
 0x55a   :  { %v5338_v34 = vpop.eup %5337  ;;  %v3957_v35 = vmul.bf16 1056980736, %v5336_v33 }
 0x55b   :  { %v3958_v36 = vmul.bf16 1056980736, %v5338_v34 }
 0x55c   :  { %v3964_v3 = vadd.bf16 1056980736, %v3957_v35 }
 0x55d   :  { %v3965_v37 = vadd.bf16 1056980736, %v3958_v36 }
 0x55f   :  { %v4457_v8 = vcombine.low %v3964_v3, %v3965_v37  ;;  %v4461_v22 = vcombine.high %v3964_v3, %v3965_v37 }
 0x561   :  { %4006 = vst [vmem:[%s7277_s10 + $0x10] sm:$0xff] %v4457_v8  ;;  %4011 = vst [vmem:[%s7277_s10 + $0x2c] sm:$0xff] %v4461_v22 }
 0x565   :  { %v4501_v4 = vpop.f32.mrb[20].mxu1 }
 0x566   :  { %v4502_v41 = vpop.f32.mrb[21].mxu1 }
 0x567   :  { %v4503_v9 = vadd.f32 %v4502_v41, %v4501_v4  ;;  %v4504_v45 = vpop.f32.mrb[22].mxu1 }
 0x568   :  { %v4505_v46 = vpop.f32.mrb[23].mxu1 }
 0x569   :  { %v3919_v1 = vadd.f32 %v4503_v9, %v3878_v42  ;;  %v4506_v48 = vadd.f32 %v4505_v46, %v4504_v45 }
 0x56b   :  { %v3922_v50 = vadd.f32 %v4506_v48, %v3881_v47  ;;  %v3931_v51 = vmul.f32 0.5, %v3919_v1 }
 0x56d   :  { %v3938_v53 = vmul.f32 0.5, %v3922_v50 }
 0x56f   :  { %v3945_v54 = vpack.c.bf16 %v3938_v53, %v3931_v51 }
 0x571   :  { %5339 = vtanh.bf16 %v3945_v54 }
 0x57c   :  { %v5340_v55 = vpop.eup %5339 }
 0x57d   :  { %v3959_v56 = vmul.bf16 1056980736, %v5340_v55 }
 0x57f   :  { %v3966_v24 = vadd.bf16 1056980736, %v3959_v56 }
 0x581   :  { %v4458_v57 = vcombine.low %v3966_v24, %v3966_v24  ;;  %v4462_v23 = vcombine.high %v3966_v24, %v3966_v24 }
 0x583   :  { %4008 = vst.msk [vmem:[%s7277_s10 + $0x18] sm:$0xf] %vm4007_vm3, %v4458_v57  ;;  %4012 = vst.msk [vmem:[%s7277_s10 + $0x34] sm:$0xf] %vm4007_vm3, %v4462_v23 }

</bundles_post_ra>
